<compile_context>
chip_gen: v7x
topology: tpu7x:2x2x1
jax: 0.10.0
libtpu: 0.0.40
codegen_flags: <defaults>
</compile_context>

<pallas_src>
import functools

import jax
import jax.numpy as jnp
from jax.experimental import pallas as pl
from jax.experimental.pallas import tpu as pltpu


def lstm_kernel(x_ref, wih0_ref, whh0_ref, b0_ref,
                wl1_ref, b1_ref, wfc_ref, bfc_ref, out_ref, *, T, B):
    H = whh0_ref.shape[0]          # whh0 is (H, 4H), pre-transposed
    G = 4 * H

    # ---- Hoisted loads: weights stay resident in vregs across the unrolled recurrence.
    whh0 = whh0_ref[...]                                   # (H, 4H)  bf16
    wl1 = wl1_ref[...]                                     # (2H, 4H) bf16 = [W_ih1; W_hh1]
    b1 = jnp.broadcast_to(b1_ref[...], (B, G))             # (B, 4H)  f32, broadcast once

    # ---- Prologue: layer-0 input projection for ALL timesteps in ONE MXU matmul,
    # with the layer-0 bias folded in.  x_ref is (T*B, I) bf16.
    x_proj = (jnp.dot(x_ref[...], wih0_ref[...],
                      preferred_element_type=jnp.float32)
              + b0_ref[...])                               # (T*B, 4H) f32

    def gates(pre):
        # PyTorch gate order: i, f, g, o
        i_g = jax.nn.sigmoid(pre[:, 0 * H:1 * H])
        f_g = jax.nn.sigmoid(pre[:, 1 * H:2 * H])
        g_g = jnp.tanh(pre[:, 2 * H:3 * H])
        o_g = jax.nn.sigmoid(pre[:, 3 * H:4 * H])
        return i_g, f_g, g_g, o_g

    h0 = jnp.zeros((B, H), jnp.float32)                    # zero initial state (as in forward)
    c0 = jnp.zeros((B, H), jnp.float32)
    h1 = jnp.zeros((B, H), jnp.float32)
    c1 = jnp.zeros((B, H), jnp.float32)

    # ---- Fully unrolled recurrence (T small & static).
    for t in range(T):
        # layer 0: only the recurrent GEMM remains on the serial path.
        pre0 = x_proj[t * B:(t + 1) * B, :] + jnp.dot(
            h0.astype(jnp.bfloat16), whh0, preferred_element_type=jnp.float32)
        i0, f0, g0, o0 = gates(pre0)
        c0 = f0 * c0 + i0 * g0
        h0 = o0 * jnp.tanh(c0)

        # layer 1: input + recurrent GEMMs fused into a single MXU push.
        # nn.LSTM inter-layer dropout and nn.Dropout are identity at inference.
        hcat = jnp.concatenate([h0, h1], axis=-1).astype(jnp.bfloat16)   # (B, 2H)
        pre1 = jnp.dot(hcat, wl1, preferred_element_type=jnp.float32) + b1
        i1, f1, g1, o1 = gates(pre1)
        c1 = f1 * c1 + i1 * g1
        h1 = o1 * jnp.tanh(c1)

    # ---- fc + softmax(dim=1) on the last timestep's top-layer hidden state.
    logits = (jnp.dot(h1.astype(jnp.bfloat16), wfc_ref[...],
                      preferred_element_type=jnp.float32) + bfc_ref[...])
    m = jnp.max(logits, axis=1, keepdims=True)
    e = jnp.exp(logits - m)
    out_ref[...] = e / jnp.sum(e, axis=1, keepdims=True)


def make_params(key, input_size, hidden_size, output_size):
    """Deterministic uniform(-k, k) init (PyTorch's scheme), fp32."""
    k = 1.0 / jnp.sqrt(jnp.float32(hidden_size))
    ks = jax.random.split(key, 10)
    u = lambda kk, shape: jax.random.uniform(kk, shape, jnp.float32, -k, k)
    return {
        "w_ih0": u(ks[0], (4 * hidden_size, input_size)),
        "w_hh0": u(ks[1], (4 * hidden_size, hidden_size)),
        "b_ih0": u(ks[2], (4 * hidden_size,)),
        "b_hh0": u(ks[3], (4 * hidden_size,)),
        "w_ih1": u(ks[4], (4 * hidden_size, hidden_size)),
        "w_hh1": u(ks[5], (4 * hidden_size, hidden_size)),
        "b_ih1": u(ks[6], (4 * hidden_size,)),
        "b_hh1": u(ks[7], (4 * hidden_size,)),
        "w_fc": u(ks[8], (output_size, hidden_size)),
        "b_fc": u(ks[9], (output_size,)),
    }


def lstm_model_forward(x, params, output_size):
    B, T, I = x.shape

    # Glue (not the hot path): time-major, flattened over (T,B) for the prologue matmul;
    # bf16 matmul inputs, f32 biases.
    x2d = jnp.transpose(x, (1, 0, 2)).reshape(T * B, I).astype(jnp.bfloat16)

    wih0 = params["w_ih0"].T.astype(jnp.bfloat16)                     # (I, 4H)
    whh0 = params["w_hh0"].T.astype(jnp.bfloat16)                     # (H, 4H)
    b0 = (params["b_ih0"] + params["b_hh0"])[None, :].astype(jnp.float32)
    wl1 = jnp.concatenate([params["w_ih1"].T, params["w_hh1"].T],
                          axis=0).astype(jnp.bfloat16)                # (2H, 4H)
    b1 = (params["b_ih1"] + params["b_hh1"])[None, :].astype(jnp.float32)
    wfc = params["w_fc"].T.astype(jnp.bfloat16)                       # (H, OUT)
    bfc = params["b_fc"][None, :].astype(jnp.float32)                 # (1, OUT)

    vmem = pl.BlockSpec(memory_space=pltpu.MemorySpace.VMEM)
    kernel = functools.partial(lstm_kernel, T=T, B=B)
    # Shapes are tiny (<1 MiB total), so everything is VMEM-resident with no grid:
    # per-step pipeline overhead would dominate any tiling at this size.
    return pl.pallas_call(
        kernel,
        out_shape=jax.ShapeDtypeStruct((B, output_size), jnp.float32),
        in_specs=[vmem] * 8,
        out_specs=vmem,
    )(x2d, wih0, whh0, b0, wl1, b1, wfc, bfc)


def lstm_reference(x, params):
    """Pure-JAX f32 reference of the PyTorch forward (inference)."""
    B, T, I = x.shape
    H = params["w_hh0"].shape[1]

    def cell(xt, h, c, wih, whh, b):
        g = xt @ wih.T + h @ whh.T + b
        i = jax.nn.sigmoid(g[:, :H])
        f = jax.nn.sigmoid(g[:, H:2 * H])
        gg = jnp.tanh(g[:, 2 * H:3 * H])
        o = jax.nn.sigmoid(g[:, 3 * H:])
        c = f * c + i * gg
        h = o * jnp.tanh(c)
        return h, c

    h0 = c0 = h1 = c1 = jnp.zeros((B, H), jnp.float32)
    b0 = params["b_ih0"] + params["b_hh0"]
    b1 = params["b_ih1"] + params["b_hh1"]
    for t in range(T):
        h0, c0 = cell(x[:, t], h0, c0, params["w_ih0"], params["w_hh0"], b0)
        h1, c1 = cell(h0, h1, c1, params["w_ih1"], params["w_hh1"], b1)
    logits = h1 @ params["w_fc"].T + params["b_fc"]
    return jax.nn.softmax(logits, axis=1)


if __name__ == "__main__":
    INPUT_SIZE = 16
    HIDDEN_SIZE = 32
    OUTPUT_SIZE = 3
    BATCH = 8          # fill the 8 f32 sublanes / MXU rows
    SEQ = 8

    key = jax.random.PRNGKey(0)
    kx, kp = jax.random.split(key)
    x = jax.random.normal(kx, (BATCH, SEQ, INPUT_SIZE), jnp.float32)
    params = make_params(kp, INPUT_SIZE, HIDDEN_SIZE, OUTPUT_SIZE)

    out = lstm_model_forward(x, params, OUTPUT_SIZE)
    out = jax.block_until_ready(out)

    assert out.shape == (BATCH, OUTPUT_SIZE)
    # softmax rows must sum to 1 (division done in f32)
    assert bool(jnp.all(jnp.abs(jnp.sum(out, axis=1) - 1.0) < 1e-5))
    # matches the f32 reference up to bf16-matmul drift
    ref = lstm_reference(x, params)
    assert bool(jnp.max(jnp.abs(out - ref)) < 5e-2)
    print("KERNEL_OK")
</pallas_src>

<mosaic_0001>
module attributes {stable_mosaic.version = 11 : i64} {
  func.func @lstm_kernel(%arg0: memref<64x16xbf16, #tpu.memory_space<vmem>>, %arg1: memref<16x128xbf16, #tpu.memory_space<vmem>>, %arg2: memref<32x128xbf16, #tpu.memory_space<vmem>>, %arg3: memref<1x128xf32, #tpu.memory_space<vmem>>, %arg4: memref<64x128xbf16, #tpu.memory_space<vmem>>, %arg5: memref<1x128xf32, #tpu.memory_space<vmem>>, %arg6: memref<32x3xbf16, #tpu.memory_space<vmem>>, %arg7: memref<1x3xf32, #tpu.memory_space<vmem>>, %arg8: memref<8x3xf32, #tpu.memory_space<vmem>>) attributes {dimension_semantics = [], scalar_prefetch = 0 : i64, scratch_operands = 0 : i64, tpu.core_type = #tpu.core_type<tc>} {
    %c0 = arith.constant 0 : index
    %c0_0 = arith.constant 0 : index
    %0 = vector.load %arg2[%c0, %c0_0] : memref<32x128xbf16, #tpu.memory_space<vmem>>, vector<32x128xbf16>
    %c0_1 = arith.constant 0 : index
    %c0_2 = arith.constant 0 : index
    %1 = vector.load %arg4[%c0_1, %c0_2] : memref<64x128xbf16, #tpu.memory_space<vmem>>, vector<64x128xbf16>
    %c0_3 = arith.constant 0 : index
    %c0_4 = arith.constant 0 : index
    %2 = vector.load %arg5[%c0_3, %c0_4] : memref<1x128xf32, #tpu.memory_space<vmem>>, vector<1x128xf32>
    %3 = vector.shape_cast %2 : vector<1x128xf32> to vector<1x128xf32>
    %4 = vector.broadcast %3 : vector<1x128xf32> to vector<8x128xf32>
    %c0_5 = arith.constant 0 : index
    %c0_6 = arith.constant 0 : index
    %5 = vector.load %arg0[%c0_5, %c0_6] : memref<64x16xbf16, #tpu.memory_space<vmem>>, vector<64x16xbf16>
    %c0_7 = arith.constant 0 : index
    %c0_8 = arith.constant 0 : index
    %6 = vector.load %arg1[%c0_7, %c0_8] : memref<16x128xbf16, #tpu.memory_space<vmem>>, vector<16x128xbf16>
    %cst = arith.constant dense<0.000000e+00> : vector<64x128xf32>
    %7 = tpu.matmul %5, %6, %cst {dimension_numbers = #tpu.dot_dimension_numbers<[1], [0], [0], [1], [0, 0, 1, 1], [], []>} : vector<64x16xbf16>, vector<16x128xbf16>, vector<64x128xf32> -> vector<64x128xf32>
    %c0_9 = arith.constant 0 : index
    %c0_10 = arith.constant 0 : index
    %8 = vector.load %arg3[%c0_9, %c0_10] : memref<1x128xf32, #tpu.memory_space<vmem>>, vector<1x128xf32>
    %9 = vector.broadcast %8 : vector<1x128xf32> to vector<64x128xf32>
    %10 = arith.addf %7, %9 : vector<64x128xf32>
    %cst_11 = arith.constant 0.000000e+00 : f32
    %11 = vector.broadcast %cst_11 : f32 to vector<8x32xf32>
    %cst_12 = arith.constant 0.000000e+00 : f32
    %12 = vector.broadcast %cst_12 : f32 to vector<8x32xf32>
    %cst_13 = arith.constant 0.000000e+00 : f32
    %13 = vector.broadcast %cst_13 : f32 to vector<8x32xf32>
    %cst_14 = arith.constant 0.000000e+00 : f32
    %14 = vector.broadcast %cst_14 : f32 to vector<8x32xf32>
    %15 = vector.extract_strided_slice %10 {offsets = [0, 0], sizes = [8, 128], strides = [1, 1]} : vector<64x128xf32> to vector<8x128xf32>
    %16 = arith.truncf %11 : vector<8x32xf32> to vector<8x32xbf16>
    %cst_15 = arith.constant dense<0.000000e+00> : vector<8x128xf32>
    %17 = tpu.matmul %16, %0, %cst_15 {dimension_numbers = #tpu.dot_dimension_numbers<[1], [0], [0], [1], [0, 0, 1, 1], [], []>} : vector<8x32xbf16>, vector<32x128xbf16>, vector<8x128xf32> -> vector<8x128xf32>
    %18 = arith.addf %15, %17 : vector<8x128xf32>
    %19 = vector.extract_strided_slice %18 {offsets = [0, 0], sizes = [8, 32], strides = [1, 1]} : vector<8x128xf32> to vector<8x32xf32>
    %20 = arith.negf %19 : vector<8x32xf32>
    %21 = math.exp %20 : vector<8x32xf32>
    %cst_16 = arith.constant 1.000000e+00 : f32
    %22 = vector.broadcast %cst_16 : f32 to vector<8x32xf32>
    %23 = arith.addf %22, %21 : vector<8x32xf32>
    %24 = arith.divf %22, %23 : vector<8x32xf32>
    %25 = vector.extract_strided_slice %18 {offsets = [0, 32], sizes = [8, 32], strides = [1, 1]} : vector<8x128xf32> to vector<8x32xf32>
    %26 = arith.negf %25 : vector<8x32xf32>
    %27 = math.exp %26 : vector<8x32xf32>
    %cst_17 = arith.constant 1.000000e+00 : f32
    %28 = vector.broadcast %cst_17 : f32 to vector<8x32xf32>
    %29 = arith.addf %28, %27 : vector<8x32xf32>
    %30 = arith.divf %28, %29 : vector<8x32xf32>
    %31 = vector.extract_strided_slice %18 {offsets = [0, 64], sizes = [8, 32], strides = [1, 1]} : vector<8x128xf32> to vector<8x32xf32>
    %32 = math.tanh %31 : vector<8x32xf32>
    %33 = vector.extract_strided_slice %18 {offsets = [0, 96], sizes = [8, 32], strides = [1, 1]} : vector<8x128xf32> to vector<8x32xf32>
    %34 = arith.negf %33 : vector<8x32xf32>
    %35 = math.exp %34 : vector<8x32xf32>
    %cst_18 = arith.constant 1.000000e+00 : f32
    %36 = vector.broadcast %cst_18 : f32 to vector<8x32xf32>
    %37 = arith.addf %36, %35 : vector<8x32xf32>
    %38 = arith.divf %36, %37 : vector<8x32xf32>
    %39 = arith.mulf %30, %12 : vector<8x32xf32>
    %40 = arith.mulf %24, %32 : vector<8x32xf32>
    %41 = arith.addf %39, %40 : vector<8x32xf32>
    %42 = math.tanh %41 : vector<8x32xf32>
    %43 = arith.mulf %38, %42 : vector<8x32xf32>
    %44 = tpu.concatenate %43, %13 in 1 : vector<8x32xf32>, vector<8x32xf32> -> vector<8x64xf32>
    %45 = arith.truncf %44 : vector<8x64xf32> to vector<8x64xbf16>
    %cst_19 = arith.constant dense<0.000000e+00> : vector<8x128xf32>
    %46 = tpu.matmul %45, %1, %cst_19 {dimension_numbers = #tpu.dot_dimension_numbers<[1], [0], [0], [1], [0, 0, 1, 1], [], []>} : vector<8x64xbf16>, vector<64x128xbf16>, vector<8x128xf32> -> vector<8x128xf32>
    %47 = arith.addf %46, %4 : vector<8x128xf32>
    %48 = vector.extract_strided_slice %47 {offsets = [0, 0], sizes = [8, 32], strides = [1, 1]} : vector<8x128xf32> to vector<8x32xf32>
    %49 = arith.negf %48 : vector<8x32xf32>
    %50 = math.exp %49 : vector<8x32xf32>
    %cst_20 = arith.constant 1.000000e+00 : f32
    %51 = vector.broadcast %cst_20 : f32 to vector<8x32xf32>
    %52 = arith.addf %51, %50 : vector<8x32xf32>
    %53 = arith.divf %51, %52 : vector<8x32xf32>
    %54 = vector.extract_strided_slice %47 {offsets = [0, 32], sizes = [8, 32], strides = [1, 1]} : vector<8x128xf32> to vector<8x32xf32>
    %55 = arith.negf %54 : vector<8x32xf32>
    %56 = math.exp %55 : vector<8x32xf32>
    %cst_21 = arith.constant 1.000000e+00 : f32
    %57 = vector.broadcast %cst_21 : f32 to vector<8x32xf32>
    %58 = arith.addf %57, %56 : vector<8x32xf32>
    %59 = arith.divf %57, %58 : vector<8x32xf32>
    %60 = vector.extract_strided_slice %47 {offsets = [0, 64], sizes = [8, 32], strides = [1, 1]} : vector<8x128xf32> to vector<8x32xf32>
    %61 = math.tanh %60 : vector<8x32xf32>
    %62 = vector.extract_strided_slice %47 {offsets = [0, 96], sizes = [8, 32], strides = [1, 1]} : vector<8x128xf32> to vector<8x32xf32>
    %63 = arith.negf %62 : vector<8x32xf32>
    %64 = math.exp %63 : vector<8x32xf32>
    %cst_22 = arith.constant 1.000000e+00 : f32
    %65 = vector.broadcast %cst_22 : f32 to vector<8x32xf32>
    %66 = arith.addf %65, %64 : vector<8x32xf32>
    %67 = arith.divf %65, %66 : vector<8x32xf32>
    %68 = arith.mulf %59, %14 : vector<8x32xf32>
    %69 = arith.mulf %53, %61 : vector<8x32xf32>
    %70 = arith.addf %68, %69 : vector<8x32xf32>
    %71 = math.tanh %70 : vector<8x32xf32>
    %72 = arith.mulf %67, %71 : vector<8x32xf32>
    %73 = vector.extract_strided_slice %10 {offsets = [8, 0], sizes = [8, 128], strides = [1, 1]} : vector<64x128xf32> to vector<8x128xf32>
    %74 = arith.truncf %43 : vector<8x32xf32> to vector<8x32xbf16>
    %cst_23 = arith.constant dense<0.000000e+00> : vector<8x128xf32>
    %75 = tpu.matmul %74, %0, %cst_23 {dimension_numbers = #tpu.dot_dimension_numbers<[1], [0], [0], [1], [0, 0, 1, 1], [], []>} : vector<8x32xbf16>, vector<32x128xbf16>, vector<8x128xf32> -> vector<8x128xf32>
    %76 = arith.addf %73, %75 : vector<8x128xf32>
    %77 = vector.extract_strided_slice %76 {offsets = [0, 0], sizes = [8, 32], strides = [1, 1]} : vector<8x128xf32> to vector<8x32xf32>
    %78 = arith.negf %77 : vector<8x32xf32>
    %79 = math.exp %78 : vector<8x32xf32>
    %cst_24 = arith.constant 1.000000e+00 : f32
    %80 = vector.broadcast %cst_24 : f32 to vector<8x32xf32>
    %81 = arith.addf %80, %79 : vector<8x32xf32>
    %82 = arith.divf %80, %81 : vector<8x32xf32>
    %83 = vector.extract_strided_slice %76 {offsets = [0, 32], sizes = [8, 32], strides = [1, 1]} : vector<8x128xf32> to vector<8x32xf32>
    %84 = arith.negf %83 : vector<8x32xf32>
    %85 = math.exp %84 : vector<8x32xf32>
    %cst_25 = arith.constant 1.000000e+00 : f32
    %86 = vector.broadcast %cst_25 : f32 to vector<8x32xf32>
    %87 = arith.addf %86, %85 : vector<8x32xf32>
    %88 = arith.divf %86, %87 : vector<8x32xf32>
    %89 = vector.extract_strided_slice %76 {offsets = [0, 64], sizes = [8, 32], strides = [1, 1]} : vector<8x128xf32> to vector<8x32xf32>
    %90 = math.tanh %89 : vector<8x32xf32>
    %91 = vector.extract_strided_slice %76 {offsets = [0, 96], sizes = [8, 32], strides = [1, 1]} : vector<8x128xf32> to vector<8x32xf32>
    %92 = arith.negf %91 : vector<8x32xf32>
    %93 = math.exp %92 : vector<8x32xf32>
    %cst_26 = arith.constant 1.000000e+00 : f32
    %94 = vector.broadcast %cst_26 : f32 to vector<8x32xf32>
    %95 = arith.addf %94, %93 : vector<8x32xf32>
    %96 = arith.divf %94, %95 : vector<8x32xf32>
    %97 = arith.mulf %88, %41 : vector<8x32xf32>
    %98 = arith.mulf %82, %90 : vector<8x32xf32>
    %99 = arith.addf %97, %98 : vector<8x32xf32>
    %100 = math.tanh %99 : vector<8x32xf32>
    %101 = arith.mulf %96, %100 : vector<8x32xf32>
    %102 = tpu.concatenate %101, %72 in 1 : vector<8x32xf32>, vector<8x32xf32> -> vector<8x64xf32>
    %103 = arith.truncf %102 : vector<8x64xf32> to vector<8x64xbf16>
    %cst_27 = arith.constant dense<0.000000e+00> : vector<8x128xf32>
    %104 = tpu.matmul %103, %1, %cst_27 {dimension_numbers = #tpu.dot_dimension_numbers<[1], [0], [0], [1], [0, 0, 1, 1], [], []>} : vector<8x64xbf16>, vector<64x128xbf16>, vector<8x128xf32> -> vector<8x128xf32>
    %105 = arith.addf %104, %4 : vector<8x128xf32>
    %106 = vector.extract_strided_slice %105 {offsets = [0, 0], sizes = [8, 32], strides = [1, 1]} : vector<8x128xf32> to vector<8x32xf32>
    %107 = arith.negf %106 : vector<8x32xf32>
    %108 = math.exp %107 : vector<8x32xf32>
    %cst_28 = arith.constant 1.000000e+00 : f32
    %109 = vector.broadcast %cst_28 : f32 to vector<8x32xf32>
    %110 = arith.addf %109, %108 : vector<8x32xf32>
    %111 = arith.divf %109, %110 : vector<8x32xf32>
    %112 = vector.extract_strided_slice %105 {offsets = [0, 32], sizes = [8, 32], strides = [1, 1]} : vector<8x128xf32> to vector<8x32xf32>
    %113 = arith.negf %112 : vector<8x32xf32>
    %114 = math.exp %113 : vector<8x32xf32>
    %cst_29 = arith.constant 1.000000e+00 : f32
    %115 = vector.broadcast %cst_29 : f32 to vector<8x32xf32>
    %116 = arith.addf %115, %114 : vector<8x32xf32>
    %117 = arith.divf %115, %116 : vector<8x32xf32>
    %118 = vector.extract_strided_slice %105 {offsets = [0, 64], sizes = [8, 32], strides = [1, 1]} : vector<8x128xf32> to vector<8x32xf32>
    %119 = math.tanh %118 : vector<8x32xf32>
    %120 = vector.extract_strided_slice %105 {offsets = [0, 96], sizes = [8, 32], strides = [1, 1]} : vector<8x128xf32> to vector<8x32xf32>
    %121 = arith.negf %120 : vector<8x32xf32>
    %122 = math.exp %121 : vector<8x32xf32>
    %cst_30 = arith.constant 1.000000e+00 : f32
    %123 = vector.broadcast %cst_30 : f32 to vector<8x32xf32>
    %124 = arith.addf %123, %122 : vector<8x32xf32>
    %125 = arith.divf %123, %124 : vector<8x32xf32>
    %126 = arith.mulf %117, %70 : vector<8x32xf32>
    %127 = arith.mulf %111, %119 : vector<8x32xf32>
    %128 = arith.addf %126, %127 : vector<8x32xf32>
    %129 = math.tanh %128 : vector<8x32xf32>
    %130 = arith.mulf %125, %129 : vector<8x32xf32>
    %131 = vector.extract_strided_slice %10 {offsets = [16, 0], sizes = [8, 128], strides = [1, 1]} : vector<64x128xf32> to vector<8x128xf32>
    %132 = arith.truncf %101 : vector<8x32xf32> to vector<8x32xbf16>
    %cst_31 = arith.constant dense<0.000000e+00> : vector<8x128xf32>
    %133 = tpu.matmul %132, %0, %cst_31 {dimension_numbers = #tpu.dot_dimension_numbers<[1], [0], [0], [1], [0, 0, 1, 1], [], []>} : vector<8x32xbf16>, vector<32x128xbf16>, vector<8x128xf32> -> vector<8x128xf32>
    %134 = arith.addf %131, %133 : vector<8x128xf32>
    %135 = vector.extract_strided_slice %134 {offsets = [0, 0], sizes = [8, 32], strides = [1, 1]} : vector<8x128xf32> to vector<8x32xf32>
    %136 = arith.negf %135 : vector<8x32xf32>
    %137 = math.exp %136 : vector<8x32xf32>
    %cst_32 = arith.constant 1.000000e+00 : f32
    %138 = vector.broadcast %cst_32 : f32 to vector<8x32xf32>
    %139 = arith.addf %138, %137 : vector<8x32xf32>
    %140 = arith.divf %138, %139 : vector<8x32xf32>
    %141 = vector.extract_strided_slice %134 {offsets = [0, 32], sizes = [8, 32], strides = [1, 1]} : vector<8x128xf32> to vector<8x32xf32>
    %142 = arith.negf %141 : vector<8x32xf32>
    %143 = math.exp %142 : vector<8x32xf32>
    %cst_33 = arith.constant 1.000000e+00 : f32
    %144 = vector.broadcast %cst_33 : f32 to vector<8x32xf32>
    %145 = arith.addf %144, %143 : vector<8x32xf32>
    %146 = arith.divf %144, %145 : vector<8x32xf32>
    %147 = vector.extract_strided_slice %134 {offsets = [0, 64], sizes = [8, 32], strides = [1, 1]} : vector<8x128xf32> to vector<8x32xf32>
    %148 = math.tanh %147 : vector<8x32xf32>
    %149 = vector.extract_strided_slice %134 {offsets = [0, 96], sizes = [8, 32], strides = [1, 1]} : vector<8x128xf32> to vector<8x32xf32>
    %150 = arith.negf %149 : vector<8x32xf32>
    %151 = math.exp %150 : vector<8x32xf32>
    %cst_34 = arith.constant 1.000000e+00 : f32
    %152 = vector.broadcast %cst_34 : f32 to vector<8x32xf32>
    %153 = arith.addf %152, %151 : vector<8x32xf32>
    %154 = arith.divf %152, %153 : vector<8x32xf32>
    %155 = arith.mulf %146, %99 : vector<8x32xf32>
    %156 = arith.mulf %140, %148 : vector<8x32xf32>
    %157 = arith.addf %155, %156 : vector<8x32xf32>
    %158 = math.tanh %157 : vector<8x32xf32>
    %159 = arith.mulf %154, %158 : vector<8x32xf32>
    %160 = tpu.concatenate %159, %130 in 1 : vector<8x32xf32>, vector<8x32xf32> -> vector<8x64xf32>
    %161 = arith.truncf %160 : vector<8x64xf32> to vector<8x64xbf16>
    %cst_35 = arith.constant dense<0.000000e+00> : vector<8x128xf32>
    %162 = tpu.matmul %161, %1, %cst_35 {dimension_numbers = #tpu.dot_dimension_numbers<[1], [0], [0], [1], [0, 0, 1, 1], [], []>} : vector<8x64xbf16>, vector<64x128xbf16>, vector<8x128xf32> -> vector<8x128xf32>
    %163 = arith.addf %162, %4 : vector<8x128xf32>
    %164 = vector.extract_strided_slice %163 {offsets = [0, 0], sizes = [8, 32], strides = [1, 1]} : vector<8x128xf32> to vector<8x32xf32>
    %165 = arith.negf %164 : vector<8x32xf32>
    %166 = math.exp %165 : vector<8x32xf32>
    %cst_36 = arith.constant 1.000000e+00 : f32
    %167 = vector.broadcast %cst_36 : f32 to vector<8x32xf32>
    %168 = arith.addf %167, %166 : vector<8x32xf32>
    %169 = arith.divf %167, %168 : vector<8x32xf32>
    %170 = vector.extract_strided_slice %163 {offsets = [0, 32], sizes = [8, 32], strides = [1, 1]} : vector<8x128xf32> to vector<8x32xf32>
    %171 = arith.negf %170 : vector<8x32xf32>
    %172 = math.exp %171 : vector<8x32xf32>
    %cst_37 = arith.constant 1.000000e+00 : f32
    %173 = vector.broadcast %cst_37 : f32 to vector<8x32xf32>
    %174 = arith.addf %173, %172 : vector<8x32xf32>
    %175 = arith.divf %173, %174 : vector<8x32xf32>
    %176 = vector.extract_strided_slice %163 {offsets = [0, 64], sizes = [8, 32], strides = [1, 1]} : vector<8x128xf32> to vector<8x32xf32>
    %177 = math.tanh %176 : vector<8x32xf32>
    %178 = vector.extract_strided_slice %163 {offsets = [0, 96], sizes = [8, 32], strides = [1, 1]} : vector<8x128xf32> to vector<8x32xf32>
    %179 = arith.negf %178 : vector<8x32xf32>
    %180 = math.exp %179 : vector<8x32xf32>
    %cst_38 = arith.constant 1.000000e+00 : f32
    %181 = vector.broadcast %cst_38 : f32 to vector<8x32xf32>
    %182 = arith.addf %181, %180 : vector<8x32xf32>
    %183 = arith.divf %181, %182 : vector<8x32xf32>
    %184 = arith.mulf %175, %128 : vector<8x32xf32>
    %185 = arith.mulf %169, %177 : vector<8x32xf32>
    %186 = arith.addf %184, %185 : vector<8x32xf32>
    %187 = math.tanh %186 : vector<8x32xf32>
    %188 = arith.mulf %183, %187 : vector<8x32xf32>
    %189 = vector.extract_strided_slice %10 {offsets = [24, 0], sizes = [8, 128], strides = [1, 1]} : vector<64x128xf32> to vector<8x128xf32>
    %190 = arith.truncf %159 : vector<8x32xf32> to vector<8x32xbf16>
    %cst_39 = arith.constant dense<0.000000e+00> : vector<8x128xf32>
    %191 = tpu.matmul %190, %0, %cst_39 {dimension_numbers = #tpu.dot_dimension_numbers<[1], [0], [0], [1], [0, 0, 1, 1], [], []>} : vector<8x32xbf16>, vector<32x128xbf16>, vector<8x128xf32> -> vector<8x128xf32>
    %192 = arith.addf %189, %191 : vector<8x128xf32>
    %193 = vector.extract_strided_slice %192 {offsets = [0, 0], sizes = [8, 32], strides = [1, 1]} : vector<8x128xf32> to vector<8x32xf32>
    %194 = arith.negf %193 : vector<8x32xf32>
    %195 = math.exp %194 : vector<8x32xf32>
    %cst_40 = arith.constant 1.000000e+00 : f32
    %196 = vector.broadcast %cst_40 : f32 to vector<8x32xf32>
    %197 = arith.addf %196, %195 : vector<8x32xf32>
    %198 = arith.divf %196, %197 : vector<8x32xf32>
    %199 = vector.extract_strided_slice %192 {offsets = [0, 32], sizes = [8, 32], strides = [1, 1]} : vector<8x128xf32> to vector<8x32xf32>
    %200 = arith.negf %199 : vector<8x32xf32>
    %201 = math.exp %200 : vector<8x32xf32>
    %cst_41 = arith.constant 1.000000e+00 : f32
    %202 = vector.broadcast %cst_41 : f32 to vector<8x32xf32>
    %203 = arith.addf %202, %201 : vector<8x32xf32>
    %204 = arith.divf %202, %203 : vector<8x32xf32>
    %205 = vector.extract_strided_slice %192 {offsets = [0, 64], sizes = [8, 32], strides = [1, 1]} : vector<8x128xf32> to vector<8x32xf32>
    %206 = math.tanh %205 : vector<8x32xf32>
    %207 = vector.extract_strided_slice %192 {offsets = [0, 96], sizes = [8, 32], strides = [1, 1]} : vector<8x128xf32> to vector<8x32xf32>
    %208 = arith.negf %207 : vector<8x32xf32>
    %209 = math.exp %208 : vector<8x32xf32>
    %cst_42 = arith.constant 1.000000e+00 : f32
    %210 = vector.broadcast %cst_42 : f32 to vector<8x32xf32>
    %211 = arith.addf %210, %209 : vector<8x32xf32>
    %212 = arith.divf %210, %211 : vector<8x32xf32>
    %213 = arith.mulf %204, %157 : vector<8x32xf32>
    %214 = arith.mulf %198, %206 : vector<8x32xf32>
    %215 = arith.addf %213, %214 : vector<8x32xf32>
    %216 = math.tanh %215 : vector<8x32xf32>
    %217 = arith.mulf %212, %216 : vector<8x32xf32>
    %218 = tpu.concatenate %217, %188 in 1 : vector<8x32xf32>, vector<8x32xf32> -> vector<8x64xf32>
    %219 = arith.truncf %218 : vector<8x64xf32> to vector<8x64xbf16>
    %cst_43 = arith.constant dense<0.000000e+00> : vector<8x128xf32>
    %220 = tpu.matmul %219, %1, %cst_43 {dimension_numbers = #tpu.dot_dimension_numbers<[1], [0], [0], [1], [0, 0, 1, 1], [], []>} : vector<8x64xbf16>, vector<64x128xbf16>, vector<8x128xf32> -> vector<8x128xf32>
    %221 = arith.addf %220, %4 : vector<8x128xf32>
    %222 = vector.extract_strided_slice %221 {offsets = [0, 0], sizes = [8, 32], strides = [1, 1]} : vector<8x128xf32> to vector<8x32xf32>
    %223 = arith.negf %222 : vector<8x32xf32>
    %224 = math.exp %223 : vector<8x32xf32>
    %cst_44 = arith.constant 1.000000e+00 : f32
    %225 = vector.broadcast %cst_44 : f32 to vector<8x32xf32>
    %226 = arith.addf %225, %224 : vector<8x32xf32>
    %227 = arith.divf %225, %226 : vector<8x32xf32>
    %228 = vector.extract_strided_slice %221 {offsets = [0, 32], sizes = [8, 32], strides = [1, 1]} : vector<8x128xf32> to vector<8x32xf32>
    %229 = arith.negf %228 : vector<8x32xf32>
    %230 = math.exp %229 : vector<8x32xf32>
    %cst_45 = arith.constant 1.000000e+00 : f32
    %231 = vector.broadcast %cst_45 : f32 to vector<8x32xf32>
    %232 = arith.addf %231, %230 : vector<8x32xf32>
    %233 = arith.divf %231, %232 : vector<8x32xf32>
    %234 = vector.extract_strided_slice %221 {offsets = [0, 64], sizes = [8, 32], strides = [1, 1]} : vector<8x128xf32> to vector<8x32xf32>
    %235 = math.tanh %234 : vector<8x32xf32>
    %236 = vector.extract_strided_slice %221 {offsets = [0, 96], sizes = [8, 32], strides = [1, 1]} : vector<8x128xf32> to vector<8x32xf32>
    %237 = arith.negf %236 : vector<8x32xf32>
    %238 = math.exp %237 : vector<8x32xf32>
    %cst_46 = arith.constant 1.000000e+00 : f32
    %239 = vector.broadcast %cst_46 : f32 to vector<8x32xf32>
    %240 = arith.addf %239, %238 : vector<8x32xf32>
    %241 = arith.divf %239, %240 : vector<8x32xf32>
    %242 = arith.mulf %233, %186 : vector<8x32xf32>
    %243 = arith.mulf %227, %235 : vector<8x32xf32>
    %244 = arith.addf %242, %243 : vector<8x32xf32>
    %245 = math.tanh %244 : vector<8x32xf32>
    %246 = arith.mulf %241, %245 : vector<8x32xf32>
    %247 = vector.extract_strided_slice %10 {offsets = [32, 0], sizes = [8, 128], strides = [1, 1]} : vector<64x128xf32> to vector<8x128xf32>
    %248 = arith.truncf %217 : vector<8x32xf32> to vector<8x32xbf16>
    %cst_47 = arith.constant dense<0.000000e+00> : vector<8x128xf32>
    %249 = tpu.matmul %248, %0, %cst_47 {dimension_numbers = #tpu.dot_dimension_numbers<[1], [0], [0], [1], [0, 0, 1, 1], [], []>} : vector<8x32xbf16>, vector<32x128xbf16>, vector<8x128xf32> -> vector<8x128xf32>
    %250 = arith.addf %247, %249 : vector<8x128xf32>
    %251 = vector.extract_strided_slice %250 {offsets = [0, 0], sizes = [8, 32], strides = [1, 1]} : vector<8x128xf32> to vector<8x32xf32>
    %252 = arith.negf %251 : vector<8x32xf32>
    %253 = math.exp %252 : vector<8x32xf32>
    %cst_48 = arith.constant 1.000000e+00 : f32
    %254 = vector.broadcast %cst_48 : f32 to vector<8x32xf32>
    %255 = arith.addf %254, %253 : vector<8x32xf32>
    %256 = arith.divf %254, %255 : vector<8x32xf32>
    %257 = vector.extract_strided_slice %250 {offsets = [0, 32], sizes = [8, 32], strides = [1, 1]} : vector<8x128xf32> to vector<8x32xf32>
    %258 = arith.negf %257 : vector<8x32xf32>
    %259 = math.exp %258 : vector<8x32xf32>
    %cst_49 = arith.constant 1.000000e+00 : f32
    %260 = vector.broadcast %cst_49 : f32 to vector<8x32xf32>
    %261 = arith.addf %260, %259 : vector<8x32xf32>
    %262 = arith.divf %260, %261 : vector<8x32xf32>
    %263 = vector.extract_strided_slice %250 {offsets = [0, 64], sizes = [8, 32], strides = [1, 1]} : vector<8x128xf32> to vector<8x32xf32>
    %264 = math.tanh %263 : vector<8x32xf32>
    %265 = vector.extract_strided_slice %250 {offsets = [0, 96], sizes = [8, 32], strides = [1, 1]} : vector<8x128xf32> to vector<8x32xf32>
    %266 = arith.negf %265 : vector<8x32xf32>
    %267 = math.exp %266 : vector<8x32xf32>
    %cst_50 = arith.constant 1.000000e+00 : f32
    %268 = vector.broadcast %cst_50 : f32 to vector<8x32xf32>
    %269 = arith.addf %268, %267 : vector<8x32xf32>
    %270 = arith.divf %268, %269 : vector<8x32xf32>
    %271 = arith.mulf %262, %215 : vector<8x32xf32>
    %272 = arith.mulf %256, %264 : vector<8x32xf32>
    %273 = arith.addf %271, %272 : vector<8x32xf32>
    %274 = math.tanh %273 : vector<8x32xf32>
    %275 = arith.mulf %270, %274 : vector<8x32xf32>
    %276 = tpu.concatenate %275, %246 in 1 : vector<8x32xf32>, vector<8x32xf32> -> vector<8x64xf32>
    %277 = arith.truncf %276 : vector<8x64xf32> to vector<8x64xbf16>
    %cst_51 = arith.constant dense<0.000000e+00> : vector<8x128xf32>
    %278 = tpu.matmul %277, %1, %cst_51 {dimension_numbers = #tpu.dot_dimension_numbers<[1], [0], [0], [1], [0, 0, 1, 1], [], []>} : vector<8x64xbf16>, vector<64x128xbf16>, vector<8x128xf32> -> vector<8x128xf32>
    %279 = arith.addf %278, %4 : vector<8x128xf32>
    %280 = vector.extract_strided_slice %279 {offsets = [0, 0], sizes = [8, 32], strides = [1, 1]} : vector<8x128xf32> to vector<8x32xf32>
    %281 = arith.negf %280 : vector<8x32xf32>
    %282 = math.exp %281 : vector<8x32xf32>
    %cst_52 = arith.constant 1.000000e+00 : f32
    %283 = vector.broadcast %cst_52 : f32 to vector<8x32xf32>
    %284 = arith.addf %283, %282 : vector<8x32xf32>
    %285 = arith.divf %283, %284 : vector<8x32xf32>
    %286 = vector.extract_strided_slice %279 {offsets = [0, 32], sizes = [8, 32], strides = [1, 1]} : vector<8x128xf32> to vector<8x32xf32>
    %287 = arith.negf %286 : vector<8x32xf32>
    %288 = math.exp %287 : vector<8x32xf32>
    %cst_53 = arith.constant 1.000000e+00 : f32
    %289 = vector.broadcast %cst_53 : f32 to vector<8x32xf32>
    %290 = arith.addf %289, %288 : vector<8x32xf32>
    %291 = arith.divf %289, %290 : vector<8x32xf32>
    %292 = vector.extract_strided_slice %279 {offsets = [0, 64], sizes = [8, 32], strides = [1, 1]} : vector<8x128xf32> to vector<8x32xf32>
    %293 = math.tanh %292 : vector<8x32xf32>
    %294 = vector.extract_strided_slice %279 {offsets = [0, 96], sizes = [8, 32], strides = [1, 1]} : vector<8x128xf32> to vector<8x32xf32>
    %295 = arith.negf %294 : vector<8x32xf32>
    %296 = math.exp %295 : vector<8x32xf32>
    %cst_54 = arith.constant 1.000000e+00 : f32
    %297 = vector.broadcast %cst_54 : f32 to vector<8x32xf32>
    %298 = arith.addf %297, %296 : vector<8x32xf32>
    %299 = arith.divf %297, %298 : vector<8x32xf32>
    %300 = arith.mulf %291, %244 : vector<8x32xf32>
    %301 = arith.mulf %285, %293 : vector<8x32xf32>
    %302 = arith.addf %300, %301 : vector<8x32xf32>
    %303 = math.tanh %302 : vector<8x32xf32>
    %304 = arith.mulf %299, %303 : vector<8x32xf32>
    %305 = vector.extract_strided_slice %10 {offsets = [40, 0], sizes = [8, 128], strides = [1, 1]} : vector<64x128xf32> to vector<8x128xf32>
    %306 = arith.truncf %275 : vector<8x32xf32> to vector<8x32xbf16>
    %cst_55 = arith.constant dense<0.000000e+00> : vector<8x128xf32>
    %307 = tpu.matmul %306, %0, %cst_55 {dimension_numbers = #tpu.dot_dimension_numbers<[1], [0], [0], [1], [0, 0, 1, 1], [], []>} : vector<8x32xbf16>, vector<32x128xbf16>, vector<8x128xf32> -> vector<8x128xf32>
    %308 = arith.addf %305, %307 : vector<8x128xf32>
    %309 = vector.extract_strided_slice %308 {offsets = [0, 0], sizes = [8, 32], strides = [1, 1]} : vector<8x128xf32> to vector<8x32xf32>
    %310 = arith.negf %309 : vector<8x32xf32>
    %311 = math.exp %310 : vector<8x32xf32>
    %cst_56 = arith.constant 1.000000e+00 : f32
    %312 = vector.broadcast %cst_56 : f32 to vector<8x32xf32>
    %313 = arith.addf %312, %311 : vector<8x32xf32>
    %314 = arith.divf %312, %313 : vector<8x32xf32>
    %315 = vector.extract_strided_slice %308 {offsets = [0, 32], sizes = [8, 32], strides = [1, 1]} : vector<8x128xf32> to vector<8x32xf32>
    %316 = arith.negf %315 : vector<8x32xf32>
    %317 = math.exp %316 : vector<8x32xf32>
    %cst_57 = arith.constant 1.000000e+00 : f32
    %318 = vector.broadcast %cst_57 : f32 to vector<8x32xf32>
    %319 = arith.addf %318, %317 : vector<8x32xf32>
    %320 = arith.divf %318, %319 : vector<8x32xf32>
    %321 = vector.extract_strided_slice %308 {offsets = [0, 64], sizes = [8, 32], strides = [1, 1]} : vector<8x128xf32> to vector<8x32xf32>
    %322 = math.tanh %321 : vector<8x32xf32>
    %323 = vector.extract_strided_slice %308 {offsets = [0, 96], sizes = [8, 32], strides = [1, 1]} : vector<8x128xf32> to vector<8x32xf32>
    %324 = arith.negf %323 : vector<8x32xf32>
    %325 = math.exp %324 : vector<8x32xf32>
    %cst_58 = arith.constant 1.000000e+00 : f32
    %326 = vector.broadcast %cst_58 : f32 to vector<8x32xf32>
    %327 = arith.addf %326, %325 : vector<8x32xf32>
    %328 = arith.divf %326, %327 : vector<8x32xf32>
    %329 = arith.mulf %320, %273 : vector<8x32xf32>
    %330 = arith.mulf %314, %322 : vector<8x32xf32>
    %331 = arith.addf %329, %330 : vector<8x32xf32>
    %332 = math.tanh %331 : vector<8x32xf32>
    %333 = arith.mulf %328, %332 : vector<8x32xf32>
    %334 = tpu.concatenate %333, %304 in 1 : vector<8x32xf32>, vector<8x32xf32> -> vector<8x64xf32>
    %335 = arith.truncf %334 : vector<8x64xf32> to vector<8x64xbf16>
    %cst_59 = arith.constant dense<0.000000e+00> : vector<8x128xf32>
    %336 = tpu.matmul %335, %1, %cst_59 {dimension_numbers = #tpu.dot_dimension_numbers<[1], [0], [0], [1], [0, 0, 1, 1], [], []>} : vector<8x64xbf16>, vector<64x128xbf16>, vector<8x128xf32> -> vector<8x128xf32>
    %337 = arith.addf %336, %4 : vector<8x128xf32>
    %338 = vector.extract_strided_slice %337 {offsets = [0, 0], sizes = [8, 32], strides = [1, 1]} : vector<8x128xf32> to vector<8x32xf32>
    %339 = arith.negf %338 : vector<8x32xf32>
    %340 = math.exp %339 : vector<8x32xf32>
    %cst_60 = arith.constant 1.000000e+00 : f32
    %341 = vector.broadcast %cst_60 : f32 to vector<8x32xf32>
    %342 = arith.addf %341, %340 : vector<8x32xf32>
    %343 = arith.divf %341, %342 : vector<8x32xf32>
    %344 = vector.extract_strided_slice %337 {offsets = [0, 32], sizes = [8, 32], strides = [1, 1]} : vector<8x128xf32> to vector<8x32xf32>
    %345 = arith.negf %344 : vector<8x32xf32>
    %346 = math.exp %345 : vector<8x32xf32>
    %cst_61 = arith.constant 1.000000e+00 : f32
    %347 = vector.broadcast %cst_61 : f32 to vector<8x32xf32>
    %348 = arith.addf %347, %346 : vector<8x32xf32>
    %349 = arith.divf %347, %348 : vector<8x32xf32>
    %350 = vector.extract_strided_slice %337 {offsets = [0, 64], sizes = [8, 32], strides = [1, 1]} : vector<8x128xf32> to vector<8x32xf32>
    %351 = math.tanh %350 : vector<8x32xf32>
    %352 = vector.extract_strided_slice %337 {offsets = [0, 96], sizes = [8, 32], strides = [1, 1]} : vector<8x128xf32> to vector<8x32xf32>
    %353 = arith.negf %352 : vector<8x32xf32>
    %354 = math.exp %353 : vector<8x32xf32>
    %cst_62 = arith.constant 1.000000e+00 : f32
    %355 = vector.broadcast %cst_62 : f32 to vector<8x32xf32>
    %356 = arith.addf %355, %354 : vector<8x32xf32>
    %357 = arith.divf %355, %356 : vector<8x32xf32>
    %358 = arith.mulf %349, %302 : vector<8x32xf32>
    %359 = arith.mulf %343, %351 : vector<8x32xf32>
    %360 = arith.addf %358, %359 : vector<8x32xf32>
    %361 = math.tanh %360 : vector<8x32xf32>
    %362 = arith.mulf %357, %361 : vector<8x32xf32>
    %363 = vector.extract_strided_slice %10 {offsets = [48, 0], sizes = [8, 128], strides = [1, 1]} : vector<64x128xf32> to vector<8x128xf32>
    %364 = arith.truncf %333 : vector<8x32xf32> to vector<8x32xbf16>
    %cst_63 = arith.constant dense<0.000000e+00> : vector<8x128xf32>
    %365 = tpu.matmul %364, %0, %cst_63 {dimension_numbers = #tpu.dot_dimension_numbers<[1], [0], [0], [1], [0, 0, 1, 1], [], []>} : vector<8x32xbf16>, vector<32x128xbf16>, vector<8x128xf32> -> vector<8x128xf32>
    %366 = arith.addf %363, %365 : vector<8x128xf32>
    %367 = vector.extract_strided_slice %366 {offsets = [0, 0], sizes = [8, 32], strides = [1, 1]} : vector<8x128xf32> to vector<8x32xf32>
    %368 = arith.negf %367 : vector<8x32xf32>
    %369 = math.exp %368 : vector<8x32xf32>
    %cst_64 = arith.constant 1.000000e+00 : f32
    %370 = vector.broadcast %cst_64 : f32 to vector<8x32xf32>
    %371 = arith.addf %370, %369 : vector<8x32xf32>
    %372 = arith.divf %370, %371 : vector<8x32xf32>
    %373 = vector.extract_strided_slice %366 {offsets = [0, 32], sizes = [8, 32], strides = [1, 1]} : vector<8x128xf32> to vector<8x32xf32>
    %374 = arith.negf %373 : vector<8x32xf32>
    %375 = math.exp %374 : vector<8x32xf32>
    %cst_65 = arith.constant 1.000000e+00 : f32
    %376 = vector.broadcast %cst_65 : f32 to vector<8x32xf32>
    %377 = arith.addf %376, %375 : vector<8x32xf32>
    %378 = arith.divf %376, %377 : vector<8x32xf32>
    %379 = vector.extract_strided_slice %366 {offsets = [0, 64], sizes = [8, 32], strides = [1, 1]} : vector<8x128xf32> to vector<8x32xf32>
    %380 = math.tanh %379 : vector<8x32xf32>
    %381 = vector.extract_strided_slice %366 {offsets = [0, 96], sizes = [8, 32], strides = [1, 1]} : vector<8x128xf32> to vector<8x32xf32>
    %382 = arith.negf %381 : vector<8x32xf32>
    %383 = math.exp %382 : vector<8x32xf32>
    %cst_66 = arith.constant 1.000000e+00 : f32
    %384 = vector.broadcast %cst_66 : f32 to vector<8x32xf32>
    %385 = arith.addf %384, %383 : vector<8x32xf32>
    %386 = arith.divf %384, %385 : vector<8x32xf32>
    %387 = arith.mulf %378, %331 : vector<8x32xf32>
    %388 = arith.mulf %372, %380 : vector<8x32xf32>
    %389 = arith.addf %387, %388 : vector<8x32xf32>
    %390 = math.tanh %389 : vector<8x32xf32>
    %391 = arith.mulf %386, %390 : vector<8x32xf32>
    %392 = tpu.concatenate %391, %362 in 1 : vector<8x32xf32>, vector<8x32xf32> -> vector<8x64xf32>
    %393 = arith.truncf %392 : vector<8x64xf32> to vector<8x64xbf16>
    %cst_67 = arith.constant dense<0.000000e+00> : vector<8x128xf32>
    %394 = tpu.matmul %393, %1, %cst_67 {dimension_numbers = #tpu.dot_dimension_numbers<[1], [0], [0], [1], [0, 0, 1, 1], [], []>} : vector<8x64xbf16>, vector<64x128xbf16>, vector<8x128xf32> -> vector<8x128xf32>
    %395 = arith.addf %394, %4 : vector<8x128xf32>
    %396 = vector.extract_strided_slice %395 {offsets = [0, 0], sizes = [8, 32], strides = [1, 1]} : vector<8x128xf32> to vector<8x32xf32>
    %397 = arith.negf %396 : vector<8x32xf32>
    %398 = math.exp %397 : vector<8x32xf32>
    %cst_68 = arith.constant 1.000000e+00 : f32
    %399 = vector.broadcast %cst_68 : f32 to vector<8x32xf32>
    %400 = arith.addf %399, %398 : vector<8x32xf32>
    %401 = arith.divf %399, %400 : vector<8x32xf32>
    %402 = vector.extract_strided_slice %395 {offsets = [0, 32], sizes = [8, 32], strides = [1, 1]} : vector<8x128xf32> to vector<8x32xf32>
    %403 = arith.negf %402 : vector<8x32xf32>
    %404 = math.exp %403 : vector<8x32xf32>
    %cst_69 = arith.constant 1.000000e+00 : f32
    %405 = vector.broadcast %cst_69 : f32 to vector<8x32xf32>
    %406 = arith.addf %405, %404 : vector<8x32xf32>
    %407 = arith.divf %405, %406 : vector<8x32xf32>
    %408 = vector.extract_strided_slice %395 {offsets = [0, 64], sizes = [8, 32], strides = [1, 1]} : vector<8x128xf32> to vector<8x32xf32>
    %409 = math.tanh %408 : vector<8x32xf32>
    %410 = vector.extract_strided_slice %395 {offsets = [0, 96], sizes = [8, 32], strides = [1, 1]} : vector<8x128xf32> to vector<8x32xf32>
    %411 = arith.negf %410 : vector<8x32xf32>
    %412 = math.exp %411 : vector<8x32xf32>
    %cst_70 = arith.constant 1.000000e+00 : f32
    %413 = vector.broadcast %cst_70 : f32 to vector<8x32xf32>
    %414 = arith.addf %413, %412 : vector<8x32xf32>
    %415 = arith.divf %413, %414 : vector<8x32xf32>
    %416 = arith.mulf %407, %360 : vector<8x32xf32>
    %417 = arith.mulf %401, %409 : vector<8x32xf32>
    %418 = arith.addf %416, %417 : vector<8x32xf32>
    %419 = math.tanh %418 : vector<8x32xf32>
    %420 = arith.mulf %415, %419 : vector<8x32xf32>
    %421 = vector.extract_strided_slice %10 {offsets = [56, 0], sizes = [8, 128], strides = [1, 1]} : vector<64x128xf32> to vector<8x128xf32>
    %422 = arith.truncf %391 : vector<8x32xf32> to vector<8x32xbf16>
    %cst_71 = arith.constant dense<0.000000e+00> : vector<8x128xf32>
    %423 = tpu.matmul %422, %0, %cst_71 {dimension_numbers = #tpu.dot_dimension_numbers<[1], [0], [0], [1], [0, 0, 1, 1], [], []>} : vector<8x32xbf16>, vector<32x128xbf16>, vector<8x128xf32> -> vector<8x128xf32>
    %424 = arith.addf %421, %423 : vector<8x128xf32>
    %425 = vector.extract_strided_slice %424 {offsets = [0, 0], sizes = [8, 32], strides = [1, 1]} : vector<8x128xf32> to vector<8x32xf32>
    %426 = arith.negf %425 : vector<8x32xf32>
    %427 = math.exp %426 : vector<8x32xf32>
    %cst_72 = arith.constant 1.000000e+00 : f32
    %428 = vector.broadcast %cst_72 : f32 to vector<8x32xf32>
    %429 = arith.addf %428, %427 : vector<8x32xf32>
    %430 = arith.divf %428, %429 : vector<8x32xf32>
    %431 = vector.extract_strided_slice %424 {offsets = [0, 32], sizes = [8, 32], strides = [1, 1]} : vector<8x128xf32> to vector<8x32xf32>
    %432 = arith.negf %431 : vector<8x32xf32>
    %433 = math.exp %432 : vector<8x32xf32>
    %cst_73 = arith.constant 1.000000e+00 : f32
    %434 = vector.broadcast %cst_73 : f32 to vector<8x32xf32>
    %435 = arith.addf %434, %433 : vector<8x32xf32>
    %436 = arith.divf %434, %435 : vector<8x32xf32>
    %437 = vector.extract_strided_slice %424 {offsets = [0, 64], sizes = [8, 32], strides = [1, 1]} : vector<8x128xf32> to vector<8x32xf32>
    %438 = math.tanh %437 : vector<8x32xf32>
    %439 = vector.extract_strided_slice %424 {offsets = [0, 96], sizes = [8, 32], strides = [1, 1]} : vector<8x128xf32> to vector<8x32xf32>
    %440 = arith.negf %439 : vector<8x32xf32>
    %441 = math.exp %440 : vector<8x32xf32>
    %cst_74 = arith.constant 1.000000e+00 : f32
    %442 = vector.broadcast %cst_74 : f32 to vector<8x32xf32>
    %443 = arith.addf %442, %441 : vector<8x32xf32>
    %444 = arith.divf %442, %443 : vector<8x32xf32>
    %445 = arith.mulf %436, %389 : vector<8x32xf32>
    %446 = arith.mulf %430, %438 : vector<8x32xf32>
    %447 = arith.addf %445, %446 : vector<8x32xf32>
    %448 = math.tanh %447 : vector<8x32xf32>
    %449 = arith.mulf %444, %448 : vector<8x32xf32>
    %450 = tpu.concatenate %449, %420 in 1 : vector<8x32xf32>, vector<8x32xf32> -> vector<8x64xf32>
    %451 = arith.truncf %450 : vector<8x64xf32> to vector<8x64xbf16>
    %cst_75 = arith.constant dense<0.000000e+00> : vector<8x128xf32>
    %452 = tpu.matmul %451, %1, %cst_75 {dimension_numbers = #tpu.dot_dimension_numbers<[1], [0], [0], [1], [0, 0, 1, 1], [], []>} : vector<8x64xbf16>, vector<64x128xbf16>, vector<8x128xf32> -> vector<8x128xf32>
    %453 = arith.addf %452, %4 : vector<8x128xf32>
    %454 = vector.extract_strided_slice %453 {offsets = [0, 0], sizes = [8, 32], strides = [1, 1]} : vector<8x128xf32> to vector<8x32xf32>
    %455 = arith.negf %454 : vector<8x32xf32>
    %456 = math.exp %455 : vector<8x32xf32>
    %cst_76 = arith.constant 1.000000e+00 : f32
    %457 = vector.broadcast %cst_76 : f32 to vector<8x32xf32>
    %458 = arith.addf %457, %456 : vector<8x32xf32>
    %459 = arith.divf %457, %458 : vector<8x32xf32>
    %460 = vector.extract_strided_slice %453 {offsets = [0, 32], sizes = [8, 32], strides = [1, 1]} : vector<8x128xf32> to vector<8x32xf32>
    %461 = arith.negf %460 : vector<8x32xf32>
    %462 = math.exp %461 : vector<8x32xf32>
    %cst_77 = arith.constant 1.000000e+00 : f32
    %463 = vector.broadcast %cst_77 : f32 to vector<8x32xf32>
    %464 = arith.addf %463, %462 : vector<8x32xf32>
    %465 = arith.divf %463, %464 : vector<8x32xf32>
    %466 = vector.extract_strided_slice %453 {offsets = [0, 64], sizes = [8, 32], strides = [1, 1]} : vector<8x128xf32> to vector<8x32xf32>
    %467 = math.tanh %466 : vector<8x32xf32>
    %468 = vector.extract_strided_slice %453 {offsets = [0, 96], sizes = [8, 32], strides = [1, 1]} : vector<8x128xf32> to vector<8x32xf32>
    %469 = arith.negf %468 : vector<8x32xf32>
    %470 = math.exp %469 : vector<8x32xf32>
    %cst_78 = arith.constant 1.000000e+00 : f32
    %471 = vector.broadcast %cst_78 : f32 to vector<8x32xf32>
    %472 = arith.addf %471, %470 : vector<8x32xf32>
    %473 = arith.divf %471, %472 : vector<8x32xf32>
    %474 = arith.mulf %465, %418 : vector<8x32xf32>
    %475 = arith.mulf %459, %467 : vector<8x32xf32>
    %476 = arith.addf %474, %475 : vector<8x32xf32>
    %477 = math.tanh %476 : vector<8x32xf32>
    %478 = arith.mulf %473, %477 : vector<8x32xf32>
    %479 = arith.truncf %478 : vector<8x32xf32> to vector<8x32xbf16>
    %c0_79 = arith.constant 0 : index
    %c0_80 = arith.constant 0 : index
    %480 = vector.load %arg6[%c0_79, %c0_80] : memref<32x3xbf16, #tpu.memory_space<vmem>>, vector<32x3xbf16>
    %cst_81 = arith.constant dense<0.000000e+00> : vector<8x3xf32>
    %481 = tpu.matmul %479, %480, %cst_81 {dimension_numbers = #tpu.dot_dimension_numbers<[1], [0], [0], [1], [0, 0, 1, 1], [], []>} : vector<8x32xbf16>, vector<32x3xbf16>, vector<8x3xf32> -> vector<8x3xf32>
    %c0_82 = arith.constant 0 : index
    %c0_83 = arith.constant 0 : index
    %482 = vector.load %arg7[%c0_82, %c0_83] : memref<1x3xf32, #tpu.memory_space<vmem>>, vector<1x3xf32>
    %483 = vector.broadcast %482 : vector<1x3xf32> to vector<8x3xf32>
    %484 = arith.addf %481, %483 : vector<8x3xf32>
    %cst_84 = arith.constant dense<0xFF800000> : vector<8xf32>
    %485 = vector.multi_reduction <maximumf>, %484, %cst_84 [1] : vector<8x3xf32> to vector<8xf32>
    %486 = vector.shape_cast %485 : vector<8xf32> to vector<8x1xf32>
    %487 = vector.broadcast %486 : vector<8x1xf32> to vector<8x3xf32>
    %488 = arith.subf %484, %487 : vector<8x3xf32>
    %489 = math.exp %488 : vector<8x3xf32>
    %cst_85 = arith.constant dense<0.000000e+00> : vector<8xf32>
    %490 = vector.multi_reduction <add>, %489, %cst_85 [1] : vector<8x3xf32> to vector<8xf32>
    %491 = vector.shape_cast %490 : vector<8xf32> to vector<8x1xf32>
    %492 = vector.broadcast %491 : vector<8x1xf32> to vector<8x3xf32>
    %493 = arith.divf %489, %492 : vector<8x3xf32>
    %c0_86 = arith.constant 0 : index
    %c0_87 = arith.constant 0 : index
    %494 = vector.load %arg8[%c0_86, %c0_87] : memref<8x3xf32, #tpu.memory_space<vmem>>, vector<8x3xf32>
    tpu.vector_store %arg8[%c0_86, %c0_87], %493 {strides = array<i32>} : memref<8x3xf32, #tpu.memory_space<vmem>>, vector<8x3xf32>,
    return
  }
}

</mosaic_0001>

<bundles_post_ra>
// kernel: tpu_custom_call.1
= control target key start
LH: loop header
LB: loop body
LE: loop exit
PB: predicated region body
PF: predicated region fallthrough
CT: control target
= control target key end

     0   :  { %v1932_v0 = vmov 0.0   ;;  %vm1933_vm0 = vmmov 0   ;;  %vm92_vm1 = vcmask 130048   ;;  %v1934_v6 = vmov 0   ;;  %s1935_s15 = smov 64   ;;  %s1936_s16 = smov 32   ;;  %s2374_s1 = inlined_call_operand.vmem [shape: bf16[16,128], index: 1, kind: input, shape index: {}]   ;;  %s2375_s2 = inlined_call_operand.vmem [shape: bf16[32,128], index: 2, kind: input, shape index: {}]   ;;  %s2376_s0 = inlined_call_operand.vmem [shape: bf16[64,16], index: 0, kind: input, shape index: {}]   ;;  %s2377_s3 = inlined_call_operand.vmem [shape: f32[1,128], index: 3, kind: input, shape index: {}]   ;;  %s2378_s4 = inlined_call_operand.vmem [shape: bf16[64,128], index: 4, kind: input, shape index: {}]   ;;  %s2379_s5 = inlined_call_operand.vmem [shape: f32[1,128], index: 5, kind: input, shape index: {}]   ;;  %s2380_s6 = inlined_call_operand.vmem [shape: bf16[32,3], index: 6, kind: input, shape index: {}]   ;;  %s2381_s7 = inlined_call_operand.vmem [shape: f32[1,3], index: 7, kind: input, shape index: {}]   ;;  %s2382_s8 = inlined_call_operand.vmem [shape: f32[8,3], index: 8, kind: output, shape index: {}]  }
   0x1   :  { %1613 = vmatprep.subr.bf16.mxu1 %v1932_v0  ;;  %v1786_v1 = vld [vmem:[%s2374_s1] sm:$0xff]   ;;  %1617 = vmatprep.mubr.msk.bf16.mxu1 %vm1933_vm0, %v1932_v0  ;;  %v1789_v4 = vld [vmem:[%s2376_s0 + $0x8] sm:$0xff]   ;;  %v1793_v28 = vld [vmem:[%s2376_s0 + $0x10] sm:$0xff]   ;;  %vm182_vm2 = vcmask 261120   ;;  %vm281_vm3 = vcmask 523264   ;;  %vm1462_vm4 = vcmask 23552  }
   0x2   :  { %v1991_v2 = vld [vmem:[%s2375_s2] sm:$0xff]   ;;  %1603 = vmatprep.subr.bf16.mxu0 %v1786_v1  ;;  %v2005_v5 = vld [vmem:[%s2375_s2 + $0x8] sm:$0xff]   ;;  %v1794_v29 = vld [vmem:[%s2376_s0 + $0x18] sm:$0xff]  }
   0x3   :  { %v1788_v3 = vld [vmem:[%s2376_s0] sm:$0xff]   ;;  %1614 = vmatpush3.bf16.msra.mxu1 %v1991_v2  ;;  %1604 = vmatpush3.bf16.msra.mxu0 %v1786_v1  ;;  %v2050_v31 = vld [vmem:[%s2378_s4 + $0x8] sm:$0xff]   ;;  %v2060_v32 = vld [vmem:[%s2378_s4 + $0x10] sm:$0xff]  }
   0x4   :  { %1605 = vmatprep.mubr.msk.bf16.mxu0 %vm92_vm1, %v1788_v3  ;;  %1615 = vmatprep.subr.bf16.mxu1 %v1932_v0  ;;  %v2020_v7 = vld [vmem:[%s2377_s3] ss:$0 sm:$0xff]  ;;  %v2069_v34 = vld [vmem:[%s2378_s4 + $0x18] sm:$0xff]  }
   0x5   :  { %1621 = vmatprep.subr.bf16.mxu0 %v1932_v0  ;;  %v2043_v30 = vld [vmem:[%s2378_s4] sm:$0xff]  }
   0x6   :  { %1606 = vmatmul.mubr.msk.bf16.vlgmr.msra.gmra.mrb[0].mxu0 %vm92_vm1, %v1789_v4  ;;  %v2107_v47 = vld [vmem:[%s2379_s5] ss:$0 sm:$0xff] }
   0x7   :  { %1616 = vmatpush3.bf16.msra.mxu1 %v2005_v5  ;;  %1609 = vmatprep.mubr.msk.bf16.mxu0 %vm92_vm1, %v1793_v28 }
   0x8   :  { %1633 = vmatprep.subr.bf16.mxu1 %v1932_v0  ;;  %1622 = vmatpush3.bf16.msra.mxu0 %v2043_v30 }
   0x9   :  { %1623 = vmatprep.subr.bf16.mxu0 %v1932_v0 }
   0xa   :  { %1618 = vmatmul.mubr.bf16.vlgmr.msra.gmra.mrb[0].mxu1 %v1934_v6 }
   0xb   :  { %1634 = vmatpush3.bf16.msra.mxu1 %v1991_v2  ;;  %1637 = vmatprep.mubr.msk.bf16.mxu1 %vm1933_vm0, %v1932_v0 }
   0xc   :  { %1635 = vmatprep.subr.bf16.mxu1 %v1932_v0  ;;  %1624 = vmatpush3.bf16.msra.mxu0 %v2050_v31 }
   0xd   :  { %1625 = vmatprep.subr.bf16.mxu0 %v1932_v0 }
   0xe   :  { %1610 = vmatmul.mubr.msk.bf16.gmra.mrb[4].mxu0 %vm92_vm1, %v1794_v29 }
   0xf   :  { %1636 = vmatpush3.bf16.msra.mxu1 %v2005_v5  ;;  %1629 = vmatprep.mubr.msk.bf16.mxu0 %vm1933_vm0, %v1932_v0 }
  0x10   :  { %1641 = vmatprep.subr.bf16.mxu1 %v1932_v0  ;;  %1626 = vmatpush3.bf16.msra.mxu0 %v2060_v32 }
  0x11   :  { %1627 = vmatprep.subr.bf16.mxu0 %v1932_v0 }
  0x14   :  { %1628 = vmatpush3.bf16.msra.mxu0 %v2069_v34 }
  0x15   :  { %1653 = vmatprep.subr.bf16.mxu0 %v1932_v0 }
  0xd9   :  { %v2022_v8 = vpop.f32.mrb[0].mxu0 }
  0xda   :  { %v139_v9 = vpop.f32.mrb[1].mxu0 }
  0xdb   :  { %v140_v10 = vadd.f32 %v2020_v7, %v139_v9  ;;  %v2025_v11 = vpop.f32.mrb[2].mxu0 }
  0xdc   :  { %v2027_v12 = vpop.f32.mrb[3].mxu0 }
  0xdd   :  { %v220_v13 = vpop.f32.mrb[0].mxu1  ;;  %v143_v46 = vadd.f32 %v2020_v7, %v2027_v12 }
  0xde   :  { %v226_v14 = vadd.f32 %v220_v13, %v140_v10  ;;  %v1619_v15 = vpop.f32.mrb[1].mxu1 }
  0xdf   :  { %v223_v16 = vpop.f32.mrb[2].mxu1 }
  0xe0   :  { %1799 = vtanh.f32 %v226_v14  ;;  %v1620_v17 = vpop.f32.mrb[3].mxu1  ;;  %v1492_v19 = vmul.f32 -1.442695, %v226_v14 }
  0xe1   :  { %v2075_v38 = vpop.f32.mrb[4].mxu0 }
  0xe2   :  { %1801 = vpow2.f32 %v1492_v19  ;;  %v2077_v39 = vpop.f32.mrb[5].mxu0 }
  0xe3   :  { %v2079_v40 = vpop.f32.mrb[6].mxu0 }
  0xe4   :  { %v2081_v41 = vpop.f32.mrb[7].mxu0 }
  0xea   :  { %v1800_v18 = vpop.eup %1799 }
  0xeb   :  { %236 = vrot.lane.b32.xlu0 %v1800_v18, %s1935_s15 }
  0xec   :  { %v1802_v20 = vpop.eup %1801 }
  0xed   :  { %v230_v21 = vadd.f32 1.0, %v1802_v20 }
  0xef   :  { %1803 = vrcp.f32 %v230_v21 }
  0xf9   :  { %v1804_v22 = vpop.eup %1803 }
  0xfa   :  { %v234_v25 = vmul.f32 0.0, %v1804_v22 }
 0x15d   :  { %v237_v23 = vpop.permute.xlu0 %236 }
 0x15e   :  { %v239_v24 = vmul.f32 %v1804_v22, %v237_v23 }
 0x160   :  { %241 = vrot.lane.b32.xlu0 %v239_v24, %s1936_s16 }
 0x1d2   :  { %v242_v26 = vpop.permute.xlu0 %241 }
 0x1d3   :  { %v2031_v27 = vadd.f32 %v242_v26, %v234_v25 }
 0x1d5   :  { %1805 = vtanh.f32 %v2031_v27 }
 0x1df   :  { %v1806_v33 = vpop.eup %1805 }
 0x1e0   :  { %247 = vrot.lane.b32.xlu1 %v1806_v33, %s1935_s15 }
 0x252   :  { %v248_v35 = vpop.permute.xlu1 %247 }
 0x253   :  { %v250_v36 = vmul.f32 %v1804_v22, %v248_v35 }
 0x255   :  { %v349_v37 = vpack.c.bf16 %v250_v36, %v250_v36  ;;  %252 = vrot.lane.b32.xlu1 %v250_v36, %s1936_s16  ;;  %v148_v36 = vadd.f32 %v2022_v8, %v2020_v7 }
 0x257   :  { %351 = vrot.lane.b32.xlu0 %v349_v37, %s1936_s16 }
 0x2c7   :  { %v253_v42 = vpop.permute.xlu1 %252 }
 0x2c8   :  { %v255_v43 = vsel %vm182_vm2, %v253_v42, 0.0 }
 0x2c9   :  { %v256_v44 = vpack.c.bf16 %v255_v43, %v255_v43  ;;  %v352_v45 = vpop.permute.xlu0 %351 }
 0x2ca   :  { %1638 = vmatmul.mubr.msk.bf16.vlgmr.msra.gmra.mrb[4].mxu1 %vm182_vm2, %v352_v45 }
 0x2cb   :  { %1630 = vmatmul.mubr.msk.bf16.vlgmr.msra.gmra.mrb[8].mxu0 %vm281_vm3, %v256_v44  ;;  %1642 = vmatpush3.bf16.msra.mxu1 %v2043_v30 }
 0x2cc   :  { %1643 = vmatprep.subr.bf16.mxu1 %v1932_v0  ;;  %1654 = vmatpush3.bf16.msra.mxu0 %v1991_v2 }
 0x2cd   :  { %1655 = vmatprep.subr.bf16.mxu0 %v1932_v0  ;;  %1649 = vmatprep.mubr.msk.bf16.mxu1 %vm1933_vm0, %v1932_v0 }
 0x2ce   :  { %1657 = vmatprep.mubr.msk.bf16.mxu0 %vm1933_vm0, %v1932_v0 }
 0x2cf   :  { %1644 = vmatpush3.bf16.msra.mxu1 %v2050_v31 }
 0x2d0   :  { %1645 = vmatprep.subr.bf16.mxu1 %v1932_v0  ;;  %1656 = vmatpush3.bf16.msra.mxu0 %v2005_v5 }
 0x2d1   :  { %1661 = vmatprep.subr.bf16.mxu0 %v1932_v0 }
 0x2d3   :  { %1646 = vmatpush3.bf16.msra.mxu1 %v2060_v32 }
 0x2d4   :  { %1647 = vmatprep.subr.bf16.mxu1 %v1932_v0 }
 0x2d7   :  { %1648 = vmatpush3.bf16.msra.mxu1 %v2069_v34 }
 0x2d8   :  { %1673 = vmatprep.subr.bf16.mxu1 %v1932_v0 }
 0x39d   :  { %v390_v48 = vpop.f32.mrb[4].mxu1 }
 0x39e   :  { %v396_v49 = vadd.f32 %v390_v48, %v143_v46  ;;  %v319_v50 = vpop.f32.mrb[8].mxu0  ;;  %v1639_v51 = vpop.f32.mrb[5].mxu1 }
 0x39f   :  { %v320_v52 = vadd.f32 %v2107_v47, %v319_v50  ;;  %v1631_v53 = vpop.f32.mrb[9].mxu0  ;;  %v393_v54 = vpop.f32.mrb[6].mxu1 }
 0x3a0   :  { %1807 = vtanh.f32 %v396_v49  ;;  %v322_v55 = vpop.f32.mrb[10].mxu0  ;;  %v1640_v56 = vpop.f32.mrb[7].mxu1  ;;  %v1500_v60 = vmul.f32 -1.442695, %v396_v49 }
 0x3a1   :  { %1809 = vtanh.f32 %v320_v52  ;;  %v1632_v57 = vpop.f32.mrb[11].mxu0  ;;  %v1498_v61 = vmul.f32 -1.442695, %v320_v52 }
 0x3a2   :  { %1811 = vpow2.f32 %v1500_v60 }
 0x3a3   :  { %1813 = vpow2.f32 %v1498_v61 }
 0x3aa   :  { %v1808_v58 = vpop.eup %1807 }
 0x3ab   :  { %v1810_v59 = vpop.eup %1809  ;;  %406 = vrot.lane.b32.xlu0 %v1808_v58, %s1935_s15 }
 0x3ac   :  { %334 = vrot.lane.b32.xlu1 %v1810_v59, %s1935_s15  ;;  %v1812_v62 = vpop.eup %1811 }
 0x3ad   :  { %v1814_v63 = vpop.eup %1813  ;;  %v400_v1 = vadd.f32 1.0, %v1812_v62 }
 0x3ae   :  { %v328_v3 = vadd.f32 1.0, %v1814_v63 }
 0x3af   :  { %1815 = vrcp.f32 %v400_v1 }
 0x3b0   :  { %1817 = vrcp.f32 %v328_v3 }
 0x3b9   :  { %v1816_v4 = vpop.eup %1815 }
 0x3ba   :  { %v1818_v9 = vpop.eup %1817  ;;  %v404_v14 = vmul.f32 %v1816_v4, %v2031_v27 }
 0x3bb   :  { %v332_v16 = vmul.f32 0.0, %v1818_v9 }
 0x41d   :  { %v407_v6 = vpop.permute.xlu0 %406 }
 0x41e   :  { %v409_v10 = vmul.f32 %v1816_v4, %v407_v6  ;;  %v335_v12 = vpop.permute.xlu1 %334 }
 0x41f   :  { %v337_v13 = vmul.f32 %v1818_v9, %v335_v12 }
 0x420   :  { %411 = vrot.lane.b32.xlu0 %v409_v10, %s1936_s16 }
 0x421   :  { %339 = vrot.lane.b32.xlu1 %v337_v13, %s1936_s16 }
 0x492   :  { %v412_v15 = vpop.permute.xlu0 %411 }
 0x493   :  { %v2115_v17 = vadd.f32 %v412_v15, %v404_v14  ;;  %v340_v18 = vpop.permute.xlu1 %339 }
 0x494   :  { %v2117_v19 = vadd.f32 %v340_v18, %v332_v16 }
 0x495   :  { %1819 = vtanh.f32 %v2115_v17 }
 0x496   :  { %1821 = vtanh.f32 %v2117_v19 }
 0x49f   :  { %v1820_v20 = vpop.eup %1819 }
 0x4a0   :  { %v1822_v21 = vpop.eup %1821  ;;  %417 = vrot.lane.b32.xlu0 %v1820_v20, %s1935_s15 }
 0x4a1   :  { %345 = vrot.lane.b32.xlu1 %v1822_v21, %s1935_s15 }
 0x512   :  { %v418_v22 = vpop.permute.xlu0 %417 }
 0x513   :  { %v420_v23 = vmul.f32 %v1816_v4, %v418_v22  ;;  %v346_v24 = vpop.permute.xlu1 %345 }
 0x514   :  { %v348_v25 = vmul.f32 %v1818_v9, %v346_v24 }
 0x515   :  { %422 = vrot.lane.b32.xlu1 %v420_v23, %s1936_s16  ;;  %v498_v26 = vpack.c.bf16 %v420_v23, %v420_v23 }
 0x516   :  { %426 = vrot.lane.b32.xlu0 %v348_v25, %s1935_s15  ;;  %v151_v25 = vadd.f32 %v2025_v11, %v2020_v7 }
 0x519   :  { %500 = vrot.lane.b32.xlu1 %v498_v26, %s1936_s16 }
 0x587   :  { %v423_v27 = vpop.permute.xlu1 %422 }
 0x588   :  { %v427_v28 = vpop.permute.xlu0 %426 }
 0x589   :  { %v429_v29 = vsel %vm182_vm2, %v423_v27, %v427_v28 }
 0x58a   :  { %v430_v33 = vpack.c.bf16 %v429_v29, %v429_v29 }
 0x58b   :  { %v501_v35 = vpop.permute.xlu1 %500 }
 0x58c   :  { %1650 = vmatmul.mubr.msk.bf16.vlgmr.msra.gmra.mrb[8].mxu1 %vm281_vm3, %v430_v33  ;;  %1658 = vmatmul.mubr.msk.bf16.vlgmr.msra.gmra.mrb[12].mxu0 %vm182_vm2, %v501_v35 }
 0x58d   :  { %1662 = vmatpush3.bf16.msra.mxu0 %v2043_v30  ;;  %1674 = vmatpush3.bf16.msra.mxu1 %v1991_v2 }
 0x58e   :  { %1663 = vmatprep.subr.bf16.mxu0 %v1932_v0  ;;  %1675 = vmatprep.subr.bf16.mxu1 %v1932_v0 }
 0x58f   :  { %1669 = vmatprep.mubr.msk.bf16.mxu0 %vm1933_vm0, %v1932_v0  ;;  %1677 = vmatprep.mubr.msk.bf16.mxu1 %vm1933_vm0, %v1932_v0 }
 0x591   :  { %1664 = vmatpush3.bf16.msra.mxu0 %v2050_v31  ;;  %1676 = vmatpush3.bf16.msra.mxu1 %v2005_v5 }
 0x592   :  { %1665 = vmatprep.subr.bf16.mxu0 %v1932_v0  ;;  %1681 = vmatprep.subr.bf16.mxu1 %v1932_v0 }
 0x595   :  { %1666 = vmatpush3.bf16.msra.mxu0 %v2060_v32 }
 0x596   :  { %1667 = vmatprep.subr.bf16.mxu0 %v1932_v0 }
 0x599   :  { %1668 = vmatpush3.bf16.msra.mxu0 %v2069_v34 }
 0x59a   :  { %1693 = vmatprep.subr.bf16.mxu0 %v1932_v0 }
 0x65f   :  { %v468_v37 = vpop.f32.mrb[8].mxu1  ;;  %v539_v42 = vpop.f32.mrb[12].mxu0 }
 0x660   :  { %v469_v43 = vadd.f32 %v2107_v47, %v468_v37  ;;  %v545_v44 = vadd.f32 %v539_v42, %v148_v36  ;;  %v1651_v45 = vpop.f32.mrb[9].mxu1  ;;  %v1659_v46 = vpop.f32.mrb[13].mxu0 }
 0x661   :  { %v471_v48 = vpop.f32.mrb[10].mxu1  ;;  %v542_v49 = vpop.f32.mrb[14].mxu0 }
 0x662   :  { %1823 = vtanh.f32 %v469_v43  ;;  %v1652_v50 = vpop.f32.mrb[11].mxu1  ;;  %v1660_v51 = vpop.f32.mrb[15].mxu0  ;;  %v1502_v8 = vmul.f32 -1.442695, %v469_v43  ;;  %v1504_v54 = vmul.f32 -1.442695, %v545_v44 }
 0x663   :  { %1825 = vtanh.f32 %v545_v44 }
 0x664   :  { %1827 = vpow2.f32 %v1502_v8 }
 0x665   :  { %1829 = vpow2.f32 %v1504_v54 }
 0x66c   :  { %v1824_v52 = vpop.eup %1823 }
 0x66d   :  { %v1826_v53 = vpop.eup %1825  ;;  %483 = vrot.lane.b32.xlu0 %v1824_v52, %s1935_s15 }
 0x66e   :  { %555 = vrot.lane.b32.xlu1 %v1826_v53, %s1935_s15  ;;  %v1828_v55 = vpop.eup %1827 }
 0x66f   :  { %v1830_v56 = vpop.eup %1829  ;;  %v477_v57 = vadd.f32 1.0, %v1828_v55 }
 0x670   :  { %v549_v58 = vadd.f32 1.0, %v1830_v56 }
 0x671   :  { %1831 = vrcp.f32 %v477_v57 }
 0x672   :  { %1833 = vrcp.f32 %v549_v58 }
 0x67b   :  { %v1832_v59 = vpop.eup %1831 }
 0x67c   :  { %v1834_v61 = vpop.eup %1833  ;;  %v481_v3 = vmul.f32 %v1832_v59, %v2117_v19 }
 0x67d   :  { %v553_v4 = vmul.f32 %v1834_v61, %v2115_v17 }
 0x6df   :  { %v484_v60 = vpop.permute.xlu0 %483 }
 0x6e0   :  { %v556_v62 = vpop.permute.xlu1 %555  ;;  %v486_v63 = vmul.f32 %v1832_v59, %v484_v60 }
 0x6e1   :  { %v558_v1 = vmul.f32 %v1834_v61, %v556_v62 }
 0x6e2   :  { %488 = vrot.lane.b32.xlu0 %v486_v63, %s1936_s16 }
 0x6e3   :  { %560 = vrot.lane.b32.xlu1 %v558_v1, %s1936_s16 }
 0x754   :  { %v489_v6 = vpop.permute.xlu0 %488 }
 0x755   :  { %v561_v9 = vpop.permute.xlu1 %560  ;;  %v2154_v10 = vadd.f32 %v489_v6, %v481_v3 }
 0x756   :  { %v2156_v12 = vadd.f32 %v561_v9, %v553_v4 }
 0x757   :  { %1835 = vtanh.f32 %v2154_v10 }
 0x758   :  { %1837 = vtanh.f32 %v2156_v12 }
 0x761   :  { %v1836_v13 = vpop.eup %1835 }
 0x762   :  { %v1838_v14 = vpop.eup %1837  ;;  %494 = vrot.lane.b32.xlu0 %v1836_v13, %s1935_s15 }
 0x763   :  { %566 = vrot.lane.b32.xlu1 %v1838_v14, %s1935_s15 }
 0x7d4   :  { %v495_v15 = vpop.permute.xlu0 %494 }
 0x7d5   :  { %v567_v16 = vpop.permute.xlu1 %566  ;;  %v497_v18 = vmul.f32 %v1832_v59, %v495_v15 }
 0x7d6   :  { %v569_v17 = vmul.f32 %v1834_v61, %v567_v16 }
 0x7d7   :  { %575 = vrot.lane.b32.xlu1 %v497_v18, %s1935_s15  ;;  %v156_v18 = vadd.f32 %v2020_v7, %v2077_v39 }
 0x7d8   :  { %571 = vrot.lane.b32.xlu0 %v569_v17, %s1936_s16  ;;  %v647_v19 = vpack.c.bf16 %v569_v17, %v569_v17 }
 0x7dc   :  { %649 = vrot.lane.b32.xlu0 %v647_v19, %s1936_s16 }
 0x849   :  { %v576_v20 = vpop.permute.xlu1 %575 }
 0x84a   :  { %v572_v21 = vpop.permute.xlu0 %571 }
 0x84b   :  { %v578_v22 = vsel %vm182_vm2, %v572_v21, %v576_v20 }
 0x84c   :  { %v579_v23 = vpack.c.bf16 %v578_v22, %v578_v22 }
 0x84e   :  { %1670 = vmatmul.mubr.msk.bf16.vlgmr.msra.gmra.mrb[16].mxu0 %vm281_vm3, %v579_v23  ;;  %v650_v24 = vpop.permute.xlu0 %649 }
 0x84f   :  { %1678 = vmatmul.mubr.msk.bf16.vlgmr.msra.gmra.mrb[12].mxu1 %vm182_vm2, %v650_v24  ;;  %1694 = vmatpush3.bf16.msra.mxu0 %v1991_v2 }
 0x850   :  { %1682 = vmatpush3.bf16.msra.mxu1 %v2043_v30  ;;  %1695 = vmatprep.subr.bf16.mxu0 %v1932_v0 }
 0x851   :  { %1683 = vmatprep.subr.bf16.mxu1 %v1932_v0  ;;  %1689 = vmatprep.mubr.msk.bf16.mxu1 %vm1933_vm0, %v1932_v0 }
 0x852   :  { %1697 = vmatprep.mubr.msk.bf16.mxu0 %vm1933_vm0, %v1932_v0 }
 0x853   :  { %1696 = vmatpush3.bf16.msra.mxu0 %v2005_v5 }
 0x854   :  { %1684 = vmatpush3.bf16.msra.mxu1 %v2050_v31  ;;  %1701 = vmatprep.subr.bf16.mxu0 %v1932_v0 }
 0x855   :  { %1685 = vmatprep.subr.bf16.mxu1 %v1932_v0 }
 0x858   :  { %1686 = vmatpush3.bf16.msra.mxu1 %v2060_v32 }
 0x859   :  { %1687 = vmatprep.subr.bf16.mxu1 %v1932_v0 }
 0x85c   :  { %1688 = vmatpush3.bf16.msra.mxu1 %v2069_v34 }
 0x85d   :  { %1713 = vmatprep.subr.bf16.mxu1 %v1932_v0 }
 0x921   :  { %v617_v26 = vpop.f32.mrb[16].mxu0 }
 0x922   :  { %v618_v27 = vadd.f32 %v2107_v47, %v617_v26  ;;  %v1671_v28 = vpop.f32.mrb[17].mxu0  ;;  %v688_v29 = vpop.f32.mrb[12].mxu1 }
 0x923   :  { %v694_v33 = vadd.f32 %v688_v29, %v151_v25  ;;  %v620_v35 = vpop.f32.mrb[18].mxu0  ;;  %v1679_v36 = vpop.f32.mrb[13].mxu1 }
 0x924   :  { %1839 = vtanh.f32 %v618_v27  ;;  %v1672_v37 = vpop.f32.mrb[19].mxu0  ;;  %v691_v42 = vpop.f32.mrb[14].mxu1  ;;  %v1506_v11 = vmul.f32 -1.442695, %v618_v27 }
 0x925   :  { %1841 = vtanh.f32 %v694_v33  ;;  %v1680_v43 = vpop.f32.mrb[15].mxu1  ;;  %v1508_v46 = vmul.f32 -1.442695, %v694_v33 }
 0x926   :  { %1843 = vpow2.f32 %v1506_v11 }
 0x927   :  { %1845 = vpow2.f32 %v1508_v46 }
 0x92e   :  { %v1840_v44 = vpop.eup %1839 }
 0x92f   :  { %v1842_v45 = vpop.eup %1841  ;;  %632 = vrot.lane.b32.xlu1 %v1840_v44, %s1935_s15 }
 0x930   :  { %704 = vrot.lane.b32.xlu0 %v1842_v45, %s1935_s15  ;;  %v1844_v48 = vpop.eup %1843 }
 0x931   :  { %v1846_v49 = vpop.eup %1845  ;;  %v626_v50 = vadd.f32 1.0, %v1844_v48 }
 0x932   :  { %v698_v51 = vadd.f32 1.0, %v1846_v49 }
 0x933   :  { %1847 = vrcp.f32 %v626_v50 }
 0x934   :  { %1849 = vrcp.f32 %v698_v51 }
 0x93d   :  { %v1848_v52 = vpop.eup %1847 }
 0x93e   :  { %v1850_v8 = vpop.eup %1849  ;;  %v630_v57 = vmul.f32 %v1848_v52, %v2154_v10 }
 0x93f   :  { %v702_v59 = vmul.f32 %v1850_v8, %v2156_v12 }
 0x9a1   :  { %v633_v53 = vpop.permute.xlu1 %632 }
 0x9a2   :  { %v635_v54 = vmul.f32 %v1848_v52, %v633_v53  ;;  %v705_v55 = vpop.permute.xlu0 %704 }
 0x9a3   :  { %v707_v56 = vmul.f32 %v1850_v8, %v705_v55 }
 0x9a4   :  { %637 = vrot.lane.b32.xlu1 %v635_v54, %s1936_s16 }
 0x9a5   :  { %709 = vrot.lane.b32.xlu0 %v707_v56, %s1936_s16 }
 0xa16   :  { %v638_v58 = vpop.permute.xlu1 %637 }
 0xa17   :  { %v2193_v60 = vadd.f32 %v638_v58, %v630_v57  ;;  %v710_v61 = vpop.permute.xlu0 %709 }
 0xa18   :  { %v2195_v62 = vadd.f32 %v710_v61, %v702_v59 }
 0xa19   :  { %1851 = vtanh.f32 %v2193_v60 }
 0xa1a   :  { %1853 = vtanh.f32 %v2195_v62 }
 0xa23   :  { %v1852_v63 = vpop.eup %1851 }
 0xa24   :  { %v1854_v1 = vpop.eup %1853  ;;  %643 = vrot.lane.b32.xlu1 %v1852_v63, %s1935_s15 }
 0xa25   :  { %715 = vrot.lane.b32.xlu0 %v1854_v1, %s1935_s15 }
 0xa96   :  { %v644_v3 = vpop.permute.xlu1 %643 }
 0xa97   :  { %v646_v4 = vmul.f32 %v1848_v52, %v644_v3  ;;  %v716_v6 = vpop.permute.xlu0 %715 }
 0xa98   :  { %v718_v9 = vmul.f32 %v1850_v8, %v716_v6 }
 0xa99   :  { %724 = vrot.lane.b32.xlu0 %v646_v4, %s1935_s15  ;;  %v159_v4 = vadd.f32 %v2020_v7, %v2081_v41 }
 0xa9a   :  { %720 = vrot.lane.b32.xlu1 %v718_v9, %s1936_s16  ;;  %v796_v10 = vpack.c.bf16 %v718_v9, %v718_v9 }
 0xa9e   :  { %798 = vrot.lane.b32.xlu1 %v796_v10, %s1936_s16 }
 0xb0b   :  { %v725_v12 = vpop.permute.xlu0 %724 }
 0xb0c   :  { %v721_v13 = vpop.permute.xlu1 %720 }
 0xb0d   :  { %v727_v14 = vsel %vm182_vm2, %v721_v13, %v725_v12 }
 0xb0e   :  { %v728_v15 = vpack.c.bf16 %v727_v14, %v727_v14 }
 0xb10   :  { %v799_v16 = vpop.permute.xlu1 %798  ;;  %1690 = vmatmul.mubr.msk.bf16.vlgmr.msra.gmra.mrb[16].mxu1 %vm281_vm3, %v728_v15 }
 0xb11   :  { %1698 = vmatmul.mubr.msk.bf16.vlgmr.msra.gmra.mrb[20].mxu0 %vm182_vm2, %v799_v16  ;;  %1714 = vmatpush3.bf16.msra.mxu1 %v1991_v2 }
 0xb12   :  { %1702 = vmatpush3.bf16.msra.mxu0 %v2043_v30  ;;  %1715 = vmatprep.subr.bf16.mxu1 %v1932_v0 }
 0xb13   :  { %1703 = vmatprep.subr.bf16.mxu0 %v1932_v0  ;;  %1709 = vmatprep.mubr.msk.bf16.mxu0 %vm1933_vm0, %v1932_v0 }
 0xb14   :  { %1717 = vmatprep.mubr.msk.bf16.mxu1 %vm1933_vm0, %v1932_v0 }
 0xb15   :  { %1716 = vmatpush3.bf16.msra.mxu1 %v2005_v5 }
 0xb16   :  { %1704 = vmatpush3.bf16.msra.mxu0 %v2050_v31  ;;  %1721 = vmatprep.subr.bf16.mxu1 %v1932_v0 }
 0xb17   :  { %1705 = vmatprep.subr.bf16.mxu0 %v1932_v0 }
 0xb1a   :  { %1706 = vmatpush3.bf16.msra.mxu0 %v2060_v32 }
 0xb1b   :  { %1707 = vmatprep.subr.bf16.mxu0 %v1932_v0 }
 0xb1e   :  { %1708 = vmatpush3.bf16.msra.mxu0 %v2069_v34 }
 0xb1f   :  { %1733 = vmatprep.subr.bf16.mxu0 %v1932_v0 }
 0xbe3   :  { %v766_v17 = vpop.f32.mrb[16].mxu1 }
 0xbe4   :  { %v767_v19 = vadd.f32 %v2107_v47, %v766_v17  ;;  %v1691_v20 = vpop.f32.mrb[17].mxu1  ;;  %v837_v21 = vpop.f32.mrb[20].mxu0 }
 0xbe5   :  { %v843_v22 = vadd.f32 %v837_v21, %v156_v18  ;;  %v769_v23 = vpop.f32.mrb[18].mxu1  ;;  %v1699_v24 = vpop.f32.mrb[21].mxu0 }
 0xbe6   :  { %1855 = vtanh.f32 %v767_v19  ;;  %v1692_v25 = vpop.f32.mrb[19].mxu1  ;;  %v840_v26 = vpop.f32.mrb[22].mxu0  ;;  %v1510_v39 = vmul.f32 -1.442695, %v767_v19 }
 0xbe7   :  { %1857 = vtanh.f32 %v843_v22  ;;  %v1700_v27 = vpop.f32.mrb[23].mxu0  ;;  %v1512_v33 = vmul.f32 -1.442695, %v843_v22 }
 0xbe8   :  { %1859 = vpow2.f32 %v1510_v39 }
 0xbe9   :  { %1861 = vpow2.f32 %v1512_v33 }
 0xbf0   :  { %v1856_v28 = vpop.eup %1855 }
 0xbf1   :  { %v1858_v29 = vpop.eup %1857  ;;  %781 = vrot.lane.b32.xlu0 %v1856_v28, %s1935_s15 }
 0xbf2   :  { %853 = vrot.lane.b32.xlu1 %v1858_v29, %s1935_s15  ;;  %v1860_v35 = vpop.eup %1859 }
 0xbf3   :  { %v1862_v36 = vpop.eup %1861  ;;  %v775_v37 = vadd.f32 1.0, %v1860_v35 }
 0xbf4   :  { %v847_v42 = vadd.f32 1.0, %v1862_v36 }
 0xbf5   :  { %1863 = vrcp.f32 %v775_v37 }
 0xbf6   :  { %1865 = vrcp.f32 %v847_v42 }
 0xbff   :  { %v1864_v43 = vpop.eup %1863 }
 0xc00   :  { %v1866_v45 = vpop.eup %1865  ;;  %v779_v49 = vmul.f32 %v1864_v43, %v2193_v60 }
 0xc01   :  { %v851_v51 = vmul.f32 %v1866_v45, %v2195_v62 }
 0xc63   :  { %v782_v44 = vpop.permute.xlu0 %781 }
 0xc64   :  { %v784_v11 = vmul.f32 %v1864_v43, %v782_v44  ;;  %v854_v46 = vpop.permute.xlu1 %853 }
 0xc65   :  { %v856_v48 = vmul.f32 %v1866_v45, %v854_v46 }
 0xc66   :  { %786 = vrot.lane.b32.xlu0 %v784_v11, %s1936_s16 }
 0xc67   :  { %858 = vrot.lane.b32.xlu1 %v856_v48, %s1936_s16 }
 0xcd8   :  { %v787_v50 = vpop.permute.xlu0 %786 }
 0xcd9   :  { %v2232_v52 = vadd.f32 %v787_v50, %v779_v49  ;;  %v859_v53 = vpop.permute.xlu1 %858 }
 0xcda   :  { %v2234_v8 = vadd.f32 %v859_v53, %v851_v51 }
 0xcdb   :  { %1867 = vtanh.f32 %v2232_v52 }
 0xcdc   :  { %1869 = vtanh.f32 %v2234_v8 }
 0xce5   :  { %v1868_v54 = vpop.eup %1867 }
 0xce6   :  { %v1870_v55 = vpop.eup %1869  ;;  %792 = vrot.lane.b32.xlu0 %v1868_v54, %s1935_s15 }
 0xce7   :  { %864 = vrot.lane.b32.xlu1 %v1870_v55, %s1935_s15 }
 0xd58   :  { %v793_v56 = vpop.permute.xlu0 %792 }
 0xd59   :  { %v795_v57 = vmul.f32 %v1864_v43, %v793_v56  ;;  %v865_v58 = vpop.permute.xlu1 %864 }
 0xd5a   :  { %v867_v59 = vmul.f32 %v1866_v45, %v865_v58 }
 0xd5b   :  { %873 = vrot.lane.b32.xlu1 %v795_v57, %s1935_s15 }
 0xd5c   :  { %869 = vrot.lane.b32.xlu0 %v867_v59, %s1936_s16  ;;  %v945_v60 = vpack.c.bf16 %v867_v59, %v867_v59 }
 0xd60   :  { %947 = vrot.lane.b32.xlu0 %v945_v60, %s1936_s16 }
 0xdcd   :  { %v874_v61 = vpop.permute.xlu1 %873 }
 0xdce   :  { %v870_v62 = vpop.permute.xlu0 %869 }
 0xdcf   :  { %v876_v63 = vsel %vm182_vm2, %v870_v62, %v874_v61 }
 0xdd0   :  { %v877_v1 = vpack.c.bf16 %v876_v63, %v876_v63 }
 0xdd2   :  { %1710 = vmatmul.mubr.msk.bf16.vlgmr.msra.gmra.mrb[24].mxu0 %vm281_vm3, %v877_v1  ;;  %v948_v3 = vpop.permute.xlu0 %947 }
 0xdd3   :  { %1718 = vmatmul.mubr.msk.bf16.vlgmr.msra.gmra.mrb[20].mxu1 %vm182_vm2, %v948_v3  ;;  %1734 = vmatpush3.bf16.msra.mxu0 %v1991_v2 }
 0xdd4   :  { %1722 = vmatpush3.bf16.msra.mxu1 %v2043_v30  ;;  %1735 = vmatprep.subr.bf16.mxu0 %v1932_v0 }
 0xdd5   :  { %1723 = vmatprep.subr.bf16.mxu1 %v1932_v0  ;;  %1729 = vmatprep.mubr.msk.bf16.mxu1 %vm1933_vm0, %v1932_v0 }
 0xdd6   :  { %1737 = vmatprep.mubr.msk.bf16.mxu0 %vm1933_vm0, %v1932_v0 }
 0xdd7   :  { %1736 = vmatpush3.bf16.msra.mxu0 %v2005_v5 }
 0xdd8   :  { %1724 = vmatpush3.bf16.msra.mxu1 %v2050_v31  ;;  %1741 = vmatprep.subr.bf16.mxu0 %v1932_v0 }
 0xdd9   :  { %1725 = vmatprep.subr.bf16.mxu1 %v1932_v0 }
 0xddc   :  { %1726 = vmatpush3.bf16.msra.mxu1 %v2060_v32 }
 0xddd   :  { %1727 = vmatprep.subr.bf16.mxu1 %v1932_v0 }
 0xde0   :  { %1728 = vmatpush3.bf16.msra.mxu1 %v2069_v34 }
 0xde1   :  { %1753 = vmatprep.subr.bf16.mxu1 %v1932_v0 }
 0xea5   :  { %v915_v6 = vpop.f32.mrb[24].mxu0 }
 0xea6   :  { %v916_v9 = vadd.f32 %v2107_v47, %v915_v6  ;;  %v1711_v10 = vpop.f32.mrb[25].mxu0  ;;  %v986_v12 = vpop.f32.mrb[20].mxu1 }
 0xea7   :  { %v992_v13 = vadd.f32 %v986_v12, %v159_v4  ;;  %v918_v14 = vpop.f32.mrb[26].mxu0  ;;  %v1719_v15 = vpop.f32.mrb[21].mxu1 }
 0xea8   :  { %1871 = vtanh.f32 %v916_v9  ;;  %v1712_v16 = vpop.f32.mrb[27].mxu0  ;;  %v989_v18 = vpop.f32.mrb[22].mxu1  ;;  %v1514_v41 = vmul.f32 -1.442695, %v916_v9 }
 0xea9   :  { %1873 = vtanh.f32 %v992_v13  ;;  %v1720_v17 = vpop.f32.mrb[23].mxu1  ;;  %v1516_v21 = vmul.f32 -1.442695, %v992_v13 }
 0xeaa   :  { %1875 = vpow2.f32 %v1514_v41 }
 0xeab   :  { %1877 = vpow2.f32 %v1516_v21 }
 0xeb2   :  { %v1872_v19 = vpop.eup %1871 }
 0xeb3   :  { %v1874_v20 = vpop.eup %1873  ;;  %930 = vrot.lane.b32.xlu1 %v1872_v19, %s1935_s15 }
 0xeb4   :  { %1002 = vrot.lane.b32.xlu0 %v1874_v20, %s1935_s15  ;;  %v1876_v22 = vpop.eup %1875 }
 0xeb5   :  { %v1878_v23 = vpop.eup %1877  ;;  %v924_v24 = vadd.f32 1.0, %v1876_v22 }
 0xeb6   :  { %v996_v25 = vadd.f32 1.0, %v1878_v23 }
 0xeb7   :  { %1879 = vrcp.f32 %v924_v24 }
 0xeb8   :  { %1881 = vrcp.f32 %v996_v25 }
 0xec1   :  { %v1880_v26 = vpop.eup %1879 }
 0xec2   :  { %v1882_v28 = vpop.eup %1881  ;;  %v928_v35 = vmul.f32 %v1880_v26, %v2232_v52 }
 0xec3   :  { %v1000_v37 = vmul.f32 %v1882_v28, %v2234_v8 }
 0xf25   :  { %v931_v27 = vpop.permute.xlu1 %930 }
 0xf26   :  { %v933_v29 = vmul.f32 %v1880_v26, %v931_v27  ;;  %v1003_v39 = vpop.permute.xlu0 %1002 }
 0xf27   :  { %v1005_v33 = vmul.f32 %v1882_v28, %v1003_v39 }
 0xf28   :  { %935 = vrot.lane.b32.xlu1 %v933_v29, %s1936_s16 }
 0xf29   :  { %1007 = vrot.lane.b32.xlu0 %v1005_v33, %s1936_s16 }
 0xf9a   :  { %v936_v36 = vpop.permute.xlu1 %935 }
 0xf9b   :  { %v2271_v42 = vadd.f32 %v936_v36, %v928_v35  ;;  %v1008_v43 = vpop.permute.xlu0 %1007 }
 0xf9c   :  { %v2273_v44 = vadd.f32 %v1008_v43, %v1000_v37  ;;  %v1931_v43 = vld [vmem:[%s2377_s3] ss:$0 sm:$0xff] }
 0xf9d   :  { %1883 = vtanh.f32 %v2271_v42 }
 0xf9e   :  { %1885 = vtanh.f32 %v2273_v44 }
 0xfa7   :  { %v1884_v45 = vpop.eup %1883 }
 0xfa8   :  { %v1886_v11 = vpop.eup %1885  ;;  %941 = vrot.lane.b32.xlu1 %v1884_v45, %s1935_s15 }
 0xfa9   :  { %1013 = vrot.lane.b32.xlu0 %v1886_v11, %s1935_s15 }
0x101a   :  { %v942_v46 = vpop.permute.xlu1 %941 }
0x101b   :  { %v944_v48 = vmul.f32 %v1880_v26, %v942_v46  ;;  %v1014_v49 = vpop.permute.xlu0 %1013 }
0x101c   :  { %v1016_v50 = vmul.f32 %v1882_v28, %v1014_v49 }
0x101d   :  { %1022 = vrot.lane.b32.xlu0 %v944_v48, %s1935_s15 }
0x101e   :  { %1018 = vrot.lane.b32.xlu1 %v1016_v50, %s1936_s16  ;;  %v1094_v51 = vpack.c.bf16 %v1016_v50, %v1016_v50 }
0x1022   :  { %1096 = vrot.lane.b32.xlu1 %v1094_v51, %s1936_s16 }
0x108f   :  { %v1023_v52 = vpop.permute.xlu0 %1022 }
0x1090   :  { %v1019_v53 = vpop.permute.xlu1 %1018 }
0x1091   :  { %v1025_v8 = vsel %vm182_vm2, %v1019_v53, %v1023_v52 }
0x1092   :  { %v1026_v54 = vpack.c.bf16 %v1025_v8, %v1025_v8 }
0x1094   :  { %v1097_v55 = vpop.permute.xlu1 %1096  ;;  %1730 = vmatmul.mubr.msk.bf16.vlgmr.msra.gmra.mrb[24].mxu1 %vm281_vm3, %v1026_v54 }
0x1095   :  { %1738 = vmatmul.mubr.msk.bf16.vlgmr.msra.gmra.mrb[28].mxu0 %vm182_vm2, %v1097_v55  ;;  %1754 = vmatpush3.bf16.msra.mxu1 %v1991_v2  ;;  %v164_v2 = vadd.f32 %v2075_v38, %v2020_v7 }
0x1096   :  { %1742 = vmatpush3.bf16.msra.mxu0 %v2043_v30  ;;  %1755 = vmatprep.subr.bf16.mxu1 %v1932_v0 }
0x1097   :  { %1743 = vmatprep.subr.bf16.mxu0 %v1932_v0  ;;  %1749 = vmatprep.mubr.msk.bf16.mxu0 %vm1933_vm0, %v1932_v0 }
0x1098   :  { %1757 = vmatprep.mubr.msk.bf16.mxu1 %vm1933_vm0, %v1932_v0 }
0x1099   :  { %1756 = vmatpush3.bf16.msra.mxu1 %v2005_v5 }
0x109a   :  { %1744 = vmatpush3.bf16.msra.mxu0 %v2050_v31  ;;  %1761 = vmatprep.subr.bf16.mxu1 %v1932_v0 }
0x109b   :  { %1745 = vmatprep.subr.bf16.mxu0 %v1932_v0 }
0x109e   :  { %1746 = vmatpush3.bf16.msra.mxu0 %v2060_v32 }
0x109f   :  { %1747 = vmatprep.subr.bf16.mxu0 %v1932_v0 }
0x10a2   :  { %1748 = vmatpush3.bf16.msra.mxu0 %v2069_v34 }
0x10a3   :  { %1773 = vmatprep.subr.bf16.mxu0 %v1932_v0 }
0x1167   :  { %v1064_v56 = vpop.f32.mrb[24].mxu1 }
0x1168   :  { %v1065_v5 = vadd.f32 %v2107_v47, %v1064_v56  ;;  %v1731_v57 = vpop.f32.mrb[25].mxu1  ;;  %v1135_v58 = vpop.f32.mrb[28].mxu0 }
0x1169   :  { %v1141_v59 = vadd.f32 %v1135_v58, %v164_v2  ;;  %v1067_v60 = vpop.f32.mrb[26].mxu1  ;;  %v1739_v61 = vpop.f32.mrb[29].mxu0 }
0x116a   :  { %1887 = vtanh.f32 %v1065_v5  ;;  %v1732_v62 = vpop.f32.mrb[27].mxu1  ;;  %v1138_v63 = vpop.f32.mrb[30].mxu0  ;;  %v1518_v7 = vmul.f32 -1.442695, %v1065_v5 }
0x116b   :  { %1889 = vtanh.f32 %v1141_v59  ;;  %v1740_v1 = vpop.f32.mrb[31].mxu0  ;;  %v1520_v38 = vmul.f32 -1.442695, %v1141_v59 }
0x116c   :  { %1891 = vpow2.f32 %v1518_v7 }
0x116d   :  { %1893 = vpow2.f32 %v1520_v38 }
0x1174   :  { %v1888_v3 = vpop.eup %1887 }
0x1175   :  { %v1890_v4 = vpop.eup %1889  ;;  %1079 = vrot.lane.b32.xlu0 %v1888_v3, %s1935_s15 }
0x1176   :  { %1151 = vrot.lane.b32.xlu1 %v1890_v4, %s1935_s15  ;;  %v1892_v6 = vpop.eup %1891 }
0x1177   :  { %v1894_v9 = vpop.eup %1893  ;;  %v1073_v10 = vadd.f32 1.0, %v1892_v6 }
0x1178   :  { %v1145_v12 = vadd.f32 1.0, %v1894_v9 }
0x1179   :  { %1895 = vrcp.f32 %v1073_v10 }
0x117a   :  { %1897 = vrcp.f32 %v1145_v12 }
0x1183   :  { %v1896_v13 = vpop.eup %1895 }
0x1184   :  { %v1898_v15 = vpop.eup %1897  ;;  %v1077_v19 = vmul.f32 %v1896_v13, %v2271_v42 }
0x1185   :  { %v1149_v41 = vmul.f32 %v1898_v15, %v2273_v44 }
0x11e7   :  { %v1080_v14 = vpop.permute.xlu0 %1079 }
0x11e8   :  { %v1082_v16 = vmul.f32 %v1896_v13, %v1080_v14  ;;  %v1152_v18 = vpop.permute.xlu1 %1151 }
0x11e9   :  { %v1154_v17 = vmul.f32 %v1898_v15, %v1152_v18 }
0x11ea   :  { %1084 = vrot.lane.b32.xlu0 %v1082_v16, %s1936_s16 }
0x11eb   :  { %1156 = vrot.lane.b32.xlu1 %v1154_v17, %s1936_s16 }
0x125c   :  { %v1085_v20 = vpop.permute.xlu0 %1084 }
0x125d   :  { %v2310_v21 = vadd.f32 %v1085_v20, %v1077_v19  ;;  %v1157_v22 = vpop.permute.xlu1 %1156 }
0x125e   :  { %v2312_v23 = vadd.f32 %v1157_v22, %v1149_v41 }
0x125f   :  { %1899 = vtanh.f32 %v2310_v21 }
0x1260   :  { %1901 = vtanh.f32 %v2312_v23 }
0x1269   :  { %v1900_v24 = vpop.eup %1899 }
0x126a   :  { %v1902_v25 = vpop.eup %1901  ;;  %1090 = vrot.lane.b32.xlu0 %v1900_v24, %s1935_s15 }
0x126b   :  { %1162 = vrot.lane.b32.xlu1 %v1902_v25, %s1935_s15 }
0x12dc   :  { %v1091_v26 = vpop.permute.xlu0 %1090 }
0x12dd   :  { %v1093_v27 = vmul.f32 %v1896_v13, %v1091_v26  ;;  %v1163_v28 = vpop.permute.xlu1 %1162 }
0x12de   :  { %v1165_v29 = vmul.f32 %v1898_v15, %v1163_v28 }
0x12df   :  { %1171 = vrot.lane.b32.xlu1 %v1093_v27, %s1935_s15 }
0x12e0   :  { %1167 = vrot.lane.b32.xlu0 %v1165_v29, %s1936_s16  ;;  %v1243_v39 = vpack.c.bf16 %v1165_v29, %v1165_v29 }
0x12e4   :  { %1245 = vrot.lane.b32.xlu0 %v1243_v39, %s1936_s16  ;;  %v1797_v39 = vld [vmem:[%s2380_s6] sm:$0xff]  }
0x1351   :  { %v1172_v33 = vpop.permute.xlu1 %1171 }
0x1352   :  { %v1168_v35 = vpop.permute.xlu0 %1167 }
0x1353   :  { %v1174_v36 = vsel %vm182_vm2, %v1168_v35, %v1172_v33  ;;  %v1798_v33 = vld [vmem:[%s2380_s6 + $0x8] sm:$0xff]  }
0x1354   :  { %v1175_v37 = vpack.c.bf16 %v1174_v36, %v1174_v36 }
0x1356   :  { %1750 = vmatmul.mubr.msk.bf16.vlgmr.msra.gmra.mrb[32].mxu0 %vm281_vm3, %v1175_v37  ;;  %v1246_v42 = vpop.permute.xlu0 %1245 }
0x1357   :  { %1758 = vmatmul.mubr.msk.bf16.vlgmr.msra.gmra.mrb[28].mxu1 %vm182_vm2, %v1246_v42  ;;  %1777 = vmatprep.mubr.msk.bf16.mxu0 %vm1933_vm0, %v1932_v0 }
0x1358   :  { %1762 = vmatpush3.bf16.msra.mxu1 %v2043_v30  ;;  %1769 = vmatprep.mubr.msk.bf16.mxu1 %vm1933_vm0, %v1932_v0  ;;  %v167_v30 = vadd.f32 %v1931_v43, %v2079_v40 }
0x1359   :  { %1763 = vmatprep.subr.bf16.mxu1 %v1932_v0  ;;  %1774 = vmatpush3.bf16.msra.mxu0 %v1797_v39 }
0x135a   :  { %1775 = vmatprep.subr.bf16.mxu0 %v1932_v0 }
0x135c   :  { %1764 = vmatpush3.bf16.msra.mxu1 %v2050_v31 }
0x135d   :  { %1765 = vmatprep.subr.bf16.mxu1 %v1932_v0  ;;  %1776 = vmatpush3.bf16.msra.mxu0 %v1798_v33 }
0x1360   :  { %1766 = vmatpush3.bf16.msra.mxu1 %v2060_v32 }
0x1361   :  { %1767 = vmatprep.subr.bf16.mxu1 %v1932_v0 }
0x1364   :  { %1768 = vmatpush3.bf16.msra.mxu1 %v2069_v34 }
0x1429   :  { %v1213_v44 = vpop.f32.mrb[32].mxu0 }
0x142a   :  { %v1214_v45 = vadd.f32 %v2107_v47, %v1213_v44  ;;  %v1751_v11 = vpop.f32.mrb[33].mxu0  ;;  %v1284_v46 = vpop.f32.mrb[28].mxu1 }
0x142b   :  { %v1290_v31 = vadd.f32 %v1284_v46, %v167_v30  ;;  %v1216_v48 = vpop.f32.mrb[34].mxu0  ;;  %v1759_v49 = vpop.f32.mrb[29].mxu1  ;;  %v1527_v30 = vld [vmem:[%s2381_s7] ss:$0 sm:$0xff] }
0x142c   :  { %1903 = vtanh.f32 %v1214_v45  ;;  %v1752_v32 = vpop.f32.mrb[35].mxu0  ;;  %v1287_v50 = vpop.f32.mrb[30].mxu1  ;;  %v1522_v40 = vmul.f32 -1.442695, %v1214_v45 }
0x142d   :  { %1905 = vtanh.f32 %v1290_v31  ;;  %v1760_v51 = vpop.f32.mrb[31].mxu1  ;;  %v1524_v53 = vmul.f32 -1.442695, %v1290_v31 }
0x142e   :  { %1907 = vpow2.f32 %v1522_v40 }
0x142f   :  { %1909 = vpow2.f32 %v1524_v53 }
0x1436   :  { %v1904_v34 = vpop.eup %1903 }
0x1437   :  { %v1906_v52 = vpop.eup %1905  ;;  %1228 = vrot.lane.b32.xlu1 %v1904_v34, %s1935_s15 }
0x1438   :  { %1300 = vrot.lane.b32.xlu0 %v1906_v52, %s1935_s15  ;;  %v1908_v8 = vpop.eup %1907 }
0x1439   :  { %v1910_v54 = vpop.eup %1909  ;;  %v1222_v55 = vadd.f32 1.0, %v1908_v8 }
0x143a   :  { %v1294_v2 = vadd.f32 1.0, %v1910_v54 }
0x143b   :  { %1911 = vrcp.f32 %v1222_v55 }
0x143c   :  { %1913 = vrcp.f32 %v1294_v2 }
0x1445   :  { %v1912_v56 = vpop.eup %1911 }
0x1446   :  { %v1914_v57 = vpop.eup %1913  ;;  %v1226_v61 = vmul.f32 %v1912_v56, %v2310_v21 }
0x1447   :  { %v1298_v63 = vmul.f32 %v1914_v57, %v2312_v23 }
0x14a9   :  { %v1229_v5 = vpop.permute.xlu1 %1228 }
0x14aa   :  { %v1231_v58 = vmul.f32 %v1912_v56, %v1229_v5  ;;  %v1301_v59 = vpop.permute.xlu0 %1300 }
0x14ab   :  { %v1303_v60 = vmul.f32 %v1914_v57, %v1301_v59 }
0x14ac   :  { %1233 = vrot.lane.b32.xlu1 %v1231_v58, %s1936_s16 }
0x14ad   :  { %1305 = vrot.lane.b32.xlu0 %v1303_v60, %s1936_s16 }
0x151e   :  { %v1234_v62 = vpop.permute.xlu1 %1233 }
0x151f   :  { %v1236_v1 = vadd.f32 %v1234_v62, %v1226_v61  ;;  %v1306_v3 = vpop.permute.xlu0 %1305 }
0x1520   :  { %v1308_v4 = vadd.f32 %v1306_v3, %v1298_v63 }
0x1521   :  { %1915 = vtanh.f32 %v1236_v1 }
0x1522   :  { %1917 = vtanh.f32 %v1308_v4 }
0x152b   :  { %v1916_v7 = vpop.eup %1915 }
0x152c   :  { %v1918_v38 = vpop.eup %1917  ;;  %1239 = vrot.lane.b32.xlu1 %v1916_v7, %s1935_s15 }
0x152d   :  { %1311 = vrot.lane.b32.xlu0 %v1918_v38, %s1935_s15 }
0x159e   :  { %v1240_v6 = vpop.permute.xlu1 %1239 }
0x159f   :  { %v1242_v9 = vmul.f32 %v1912_v56, %v1240_v6  ;;  %v1312_v10 = vpop.permute.xlu0 %1311 }
0x15a0   :  { %v1314_v12 = vmul.f32 %v1914_v57, %v1312_v10 }
0x15a1   :  { %1320 = vrot.lane.b32.xlu0 %v1242_v9, %s1935_s15 }
0x15a2   :  { %1316 = vrot.lane.b32.xlu1 %v1314_v12, %s1936_s16 }
0x1613   :  { %v1321_v13 = vpop.permute.xlu0 %1320 }
0x1614   :  { %v1317_v14 = vpop.permute.xlu1 %1316 }
0x1615   :  { %v1323_v15 = vsel %vm182_vm2, %v1317_v14, %v1321_v13 }
0x1616   :  { %v1324_v16 = vpack.c.bf16 %v1323_v15, %v1323_v15 }
0x1618   :  { %1770 = vmatmul.mubr.msk.bf16.vlgmr.msra.gmra.mrb[32].mxu1 %vm281_vm3, %v1324_v16 }
0x16eb   :  { %v1362_v18 = vpop.f32.mrb[32].mxu1 }
0x16ec   :  { %v1363_v17 = vadd.f32 %v2107_v47, %v1362_v18  ;;  %v1771_v19 = vpop.f32.mrb[33].mxu1 }
0x16ed   :  { %v1365_v20 = vpop.f32.mrb[34].mxu1 }
0x16ee   :  { %1919 = vtanh.f32 %v1363_v17  ;;  %v1772_v41 = vpop.f32.mrb[35].mxu1  ;;  %v1526_v22 = vmul.f32 -1.442695, %v1363_v17 }
0x16f0   :  { %1921 = vpow2.f32 %v1526_v22 }
0x16f8   :  { %v1920_v21 = vpop.eup %1919 }
0x16f9   :  { %1377 = vrot.lane.b32.xlu1 %v1920_v21, %s1935_s15 }
0x16fa   :  { %v1922_v23 = vpop.eup %1921 }
0x16fb   :  { %v1371_v24 = vadd.f32 1.0, %v1922_v23 }
0x16fd   :  { %1923 = vrcp.f32 %v1371_v24 }
0x1707   :  { %v1924_v25 = vpop.eup %1923 }
0x1708   :  { %v1375_v28 = vmul.f32 %v1924_v25, %v1236_v1 }
0x176b   :  { %v1378_v26 = vpop.permute.xlu1 %1377 }
0x176c   :  { %v1380_v27 = vmul.f32 %v1924_v25, %v1378_v26 }
0x176e   :  { %1382 = vrot.lane.b32.xlu0 %v1380_v27, %s1936_s16 }
0x17e0   :  { %v1383_v29 = vpop.permute.xlu0 %1382 }
0x17e1   :  { %v1385_v47 = vadd.f32 %v1383_v29, %v1375_v28 }
0x17e3   :  { %1925 = vtanh.f32 %v1385_v47 }
0x17ed   :  { %v1926_v35 = vpop.eup %1925 }
0x17ee   :  { %1388 = vrot.lane.b32.xlu1 %v1926_v35, %s1935_s15 }
0x1860   :  { %v1389_v36 = vpop.permute.xlu1 %1388 }
0x1861   :  { %v1391_v37 = vmul.f32 %v1924_v25, %v1389_v36 }
0x1863   :  { %v1392_v42 = vpack.c.bf16 %v1391_v37, %v1391_v37 }
0x1865   :  { %1405 = vrot.lane.b32.xlu0 %v1392_v42, %s1936_s16 }
0x18d7   :  { %v1406_v43 = vpop.permute.xlu0 %1405 }
0x18d8   :  { %1778 = vmatmul.mubr.msk.bf16.vlgmr.msra.gmra.mrb[36].mxu0 %vm182_vm2, %v1406_v43 }
0x19ab   :  { %v1456_v44 = vpop.f32.mrb[36].mxu0 }
0x19ac   :  { %v1457_v45 = vadd.f32 %v1527_v30, %v1456_v44  ;;  %v1779_v0 = vpop.f32.mrb[37].mxu0 }
0x19ad   :  { %v1459_v11 = vpop.f32.mrb[38].mxu0 }
0x19ae   :  { %v1780_v46 = vpop.f32.mrb[39].mxu0  ;;  %v1463_v31 = vsel %vm1462_vm4, %v1457_v45, -inf }
0x19af   :  { %1464 = vmax.xlane.f32.xlu1 %v1463_v31 }
0x1a3c   :  { %v1465_v48 = vpop.xlane.xlu1 %1464 }
0x1a3d   :  { %v1466_v49 = vsub.f32 %v1457_v45, %v1465_v48 }
0x1a3f   :  { %v1467_v32 = vmul.f32 1.442695, %v1466_v49 }
0x1a41   :  { %1927 = vpow2.f32 %v1467_v32 }
0x1a4b   :  { %v1928_v50 = vpop.eup %1927 }
0x1a4c   :  { %v1469_v51 = vsel %vm1462_vm4, %v1928_v50, 0.0 }
0x1a4d   :  { %1470 = vadd.xlane.f32.xlu0 %v1469_v51 }
0x1ada   :  { %v1471_v34 = vpop.xlane.xlu0 %1470 }
0x1adb   :  { %1929 = vrcp.f32 %v1471_v34 }
0x1ae5   :  { %v1930_v52 = vpop.eup %1929 }
0x1ae6   :  { %v1473_v40 = vmul.f32 %v1930_v52, %v1928_v50 }
0x1ae8   :  { %1474 = vst.msk [vmem:[%s2382_s8] sm:$0xff] %vm1462_vm4, %v1473_v40 }

</bundles_post_ra>
